<compile_context>
chip_gen: v7x
topology: tpu7x:2x2x1
jax: 0.10.0
libtpu: 0.0.40
codegen_flags: <defaults>
</compile_context>

<pallas_src>
import functools

import jax
import jax.numpy as jnp
from jax.experimental import pallas as pl
from jax.experimental.pallas import tpu as pltpu


def _round_up(x, m):
    return ((x + m - 1) // m) * m


def fused_siren_kernel(x_ref, *rest, w0, num_layers):
    """rest = (w_0, b_0, ..., w_{L-1}, b_{L-1}, o_ref); all tiles are lane-dense."""
    o_ref = rest[-1]
    param_refs = rest[:-1]
    h = x_ref[...]                                     # (tm, din_p) f32
    for layer in range(num_layers):                    # unrolled: activations stay in VMEM/vregs
        w = param_refs[2 * layer][...]                 # (din_p, dout_p), VMEM-resident
        b = param_refs[2 * layer + 1][...]             # (1, dout_p)
        y = jnp.dot(h, w, preferred_element_type=jnp.float32,
                    precision=jax.lax.Precision.HIGHEST)
        y = y + b                                      # broadcast bias add (VPU)
        # Dropout: eval-mode identity (inference).
        h = jnp.sin(w0 * y)                            # EUP transcendental
    o_ref[...] = h.astype(o_ref.dtype)


def siren_model_forward(x, params, *, w0=30.0, tm=None):
    """Apply a stack of SirenLayers. x: (N, din); params: list of (w:(din,dout), b:(1,dout))."""
    N, din = x.shape
    num_layers = len(params)
    dout_final = params[-1][0].shape[1]

    # Lane-dense padding of every feature dim to a multiple of 128 (exact, see header).
    din_p = _round_up(din, 128)
    padded = []
    for (w, b) in params:
        di, do = w.shape
        di_p, do_p = _round_up(di, 128), _round_up(do, 128)
        w_p = jnp.pad(w.astype(jnp.float32), ((0, di_p - di), (0, do_p - do)))
        b_p = jnp.pad(b.astype(jnp.float32).reshape(1, do), ((0, 0), (0, do_p - do)))
        padded.append((w_p, b_p))
    dout_p = padded[-1][0].shape[1]

    # Large batch tiles (up to 1024 rows), always a multiple of 8; pad batch instead of asserting.
    if tm is None:
        tm = max(8, min(1024, _round_up(N, 8)))
    n_p = _round_up(N, tm)
    x_p = jnp.pad(x.astype(jnp.float32), ((0, n_p - N), (0, din_p - din)))

    in_specs = [pl.BlockSpec((tm, din_p), lambda i: (i, 0))]
    flat_inputs = [x_p]
    for (w_p, b_p) in padded:
        # Constant index_map -> parameters DMA'd once and kept resident across batch tiles.
        in_specs.append(pl.BlockSpec(w_p.shape, lambda i: (0, 0)))
        in_specs.append(pl.BlockSpec(b_p.shape, lambda i: (0, 0)))
        flat_inputs += [w_p, b_p]

    out = pl.pallas_call(
        functools.partial(fused_siren_kernel, w0=w0, num_layers=num_layers),
        out_shape=jax.ShapeDtypeStruct((n_p, dout_p), jnp.float32),
        grid=(n_p // tm,),
        in_specs=in_specs,
        out_specs=pl.BlockSpec((tm, dout_p), lambda i: (i, 0)),
        compiler_params=pltpu.CompilerParams(
            dimension_semantics=("parallel",),
            vmem_limit_bytes=64 << 20,
        ),
    )(*flat_inputs)
    return out[:N, :dout_final]


def siren_layer(x, w, b, *, w0=30.0, tm=None):
    """Single SirenLayer: sin(w0 * (x @ w + b)), dropout = eval-mode identity."""
    return siren_model_forward(x, [(w, b)], w0=w0, tm=tm)


def init_siren_params(key, in_features, hidden_features, hidden_layers, out_features):
    """Deterministic init mimicking nn.Linear default: U(-1/sqrt(fan_in), 1/sqrt(fan_in)).
    Weights stored pre-transposed as (in, out); PyTorch stores (out, in) and does x @ W.T."""
    dims = [in_features] + [hidden_features] * (hidden_layers + 1) + [out_features]
    params = []
    for li in range(len(dims) - 1):
        din, dout = dims[li], dims[li + 1]
        key, kw, kb = jax.random.split(key, 3)
        bound = 1.0 / (din ** 0.5)
        w = jax.random.uniform(kw, (din, dout), jnp.float32, -bound, bound)
        b = jax.random.uniform(kb, (1, dout), jnp.float32, -bound, bound)
        params.append((w, b))
    return params


def siren_model_ref(x, params, *, w0=30.0):
    """Pure-JAX reference with f32-precision matmuls (matches the kernel's precision)."""
    y = x
    for (w, b) in params:
        y = jnp.sin(w0 * (jnp.dot(y, w, precision=jax.lax.Precision.HIGHEST) + b))
    return y


if __name__ == "__main__":
    # Small shapes consistent with the module: coordinates-in / values-out MLP.
    batch = 64
    in_features = 4
    hidden_features = 32
    hidden_layers = 2
    out_features = 3
    w0 = 30.0

    key = jax.random.PRNGKey(0)
    key, kx = jax.random.split(key)
    x = jax.random.normal(kx, (batch, in_features), jnp.float32)
    params = init_siren_params(
        key, in_features, hidden_features, hidden_layers, out_features
    )

    # --- Single SirenLayer (the spec module): tight check, no chaotic amplification.
    w1, b1 = params[0]
    y1 = jax.block_until_ready(siren_layer(x, w1, b1, w0=w0))
    y1_ref = jnp.sin(w0 * (jnp.dot(x, w1, precision=jax.lax.Precision.HIGHEST) + b1))
    assert y1.shape == (batch, hidden_features)
    err1 = float(jnp.max(jnp.abs(y1 - y1_ref)))
    assert err1 < 2e-4, f"single-layer mismatch, max abs err {err1}"

    # --- Full fused stack. w0=30 amplifies ulp-level matmul/sin differences chaotically
    # across layers, so use a loose-but-bug-catching tolerance (a wrong kernel gives
    # O(1) errors; numeric noise stays orders of magnitude below this).
    out = jax.block_until_ready(siren_model_forward(x, params, w0=w0))
    ref = siren_model_ref(x, params, w0=w0)
    assert out.shape == (batch, out_features)
    err = float(jnp.max(jnp.abs(out - ref)))
    assert err < 2e-2, f"fused-model mismatch, max abs err {err}"

    print("KERNEL_OK")
</pallas_src>

<mosaic_0001>
module attributes {stable_mosaic.version = 11 : i64} {
  func.func @fused_siren_kernel(%arg0: i32, %arg1: memref<64x128xf32, #tpu.memory_space<vmem>>, %arg2: memref<128x128xf32, #tpu.memory_space<vmem>>, %arg3: memref<1x128xf32, #tpu.memory_space<vmem>>, %arg4: memref<64x128xf32, #tpu.memory_space<vmem>>) attributes {dimension_semantics = [#tpu.dimension_semantics<parallel>], iteration_bounds = array<i64: 1>, scalar_prefetch = 0 : i64, scratch_operands = 0 : i64, tpu.core_type = #tpu.core_type<tc>, window_params = [{transform_indices = @transform_0, window_bounds = array<i64: 64, 128>}, {pipeline_mode = #tpu.pipeline_mode<synchronous>, transform_indices = @transform_1, window_bounds = array<i64: 128, 128>}, {pipeline_mode = #tpu.pipeline_mode<synchronous>, transform_indices = @transform_2, window_bounds = array<i64: 1, 128>}, {transform_indices = @transform_3, window_bounds = array<i64: 64, 128>}]} {
    %c0 = arith.constant 0 : index
    %c0_0 = arith.constant 0 : index
    %0 = vector.load %arg1[%c0, %c0_0] : memref<64x128xf32, #tpu.memory_space<vmem>>, vector<64x128xf32>
    %c0_1 = arith.constant 0 : index
    %c0_2 = arith.constant 0 : index
    %1 = vector.load %arg2[%c0_1, %c0_2] : memref<128x128xf32, #tpu.memory_space<vmem>>, vector<128x128xf32>
    %c0_3 = arith.constant 0 : index
    %c0_4 = arith.constant 0 : index
    %2 = vector.load %arg3[%c0_3, %c0_4] : memref<1x128xf32, #tpu.memory_space<vmem>>, vector<1x128xf32>
    %cst = arith.constant dense<0.000000e+00> : vector<64x128xf32>
    %3 = tpu.matmul %0, %1, %cst {dimension_numbers = #tpu.dot_dimension_numbers<[1], [0], [0], [1], [0, 0, 1, 1], [], []>, precision = #tpu.contract_precision<fp32>} : vector<64x128xf32>, vector<128x128xf32>, vector<64x128xf32> -> vector<64x128xf32>
    %4 = vector.broadcast %2 : vector<1x128xf32> to vector<64x128xf32>
    %5 = arith.addf %3, %4 : vector<64x128xf32>
    %cst_5 = arith.constant 3.000000e+01 : f32
    %6 = vector.broadcast %cst_5 : f32 to vector<64x128xf32>
    %7 = arith.mulf %6, %5 : vector<64x128xf32>
    %8 = math.sin %7 : vector<64x128xf32>
    %c0_6 = arith.constant 0 : index
    %c0_7 = arith.constant 0 : index
    %9 = vector.load %arg4[%c0_6, %c0_7] : memref<64x128xf32, #tpu.memory_space<vmem>>, vector<64x128xf32>
    tpu.vector_store %arg4[%c0_6, %c0_7], %8 {strides = array<i32>} : memref<64x128xf32, #tpu.memory_space<vmem>>, vector<64x128xf32>,
    return
  }
  func.func @transform_0(%arg0: i32) -> (i32, i32) {
    %c0_i32 = arith.constant 0 : i32
    %c0_i32_0 = arith.constant 0 : i32
    return %arg0, %c0_i32 : i32, i32
  }
  func.func @transform_1(%arg0: i32) -> (i32, i32) {
    %c0_i32 = arith.constant 0 : i32
    %c0_i32_0 = arith.constant 0 : i32
    %c0_i32_1 = arith.constant 0 : i32
    return %c0_i32, %c0_i32_0 : i32, i32
  }
  func.func @transform_2(%arg0: i32) -> (i32, i32) {
    %c0_i32 = arith.constant 0 : i32
    %c0_i32_0 = arith.constant 0 : i32
    %c0_i32_1 = arith.constant 0 : i32
    return %c0_i32, %c0_i32_0 : i32, i32
  }
  func.func @transform_3(%arg0: i32) -> (i32, i32) {
    %c0_i32 = arith.constant 0 : i32
    %c0_i32_0 = arith.constant 0 : i32
    return %arg0, %c0_i32 : i32, i32
  }
}

</mosaic_0001>

<bundles_post_ra>
// kernel: tpu_custom_call.1
= control target key start
LH: loop header
LB: loop body
LE: loop exit
PB: predicated region body
PF: predicated region fallthrough
CT: control target
= control target key end

     0   :  { %8 = vsyncpa [#allocation3], 0  ;;  %s3861_s0 = inlined_call_operand.hbm [shape: f32[64,128], index: 0, kind: input, shape index: {}]   ;;  %s3862_s1 = inlined_call_operand.hbm [shape: f32[128,128], index: 1, kind: input, shape index: {}]   ;;  %s3863_s2 = inlined_call_operand.hbm [shape: f32[1,128], index: 2, kind: input, shape index: {}]   ;;  %s3864_s3 = inlined_call_operand.hbm [shape: f32[64,128], index: 3, kind: output, shape index: {}]  }
   0x1   :  { %9 = vsyncpa [#allocation6], 0 }
   0x2   :  { %10 = vsyncpa [#allocation4], 0  ;;  %s2744_s12 = smov [#allocation5]   ;;  %s2745_s14 = smov [#allocation2]  }
   0x3   :  { %s28_s13 = sshll.u32 %s2744_s12, 4  ;;  %s16_s15 = sshll.u32 %s2745_s14, 4  ;;  %s29_s13 = int_to_ptr.vmem [resolvable:$true] %s28_s13  ;;  %s2776_s15 = int_to_ptr.vmem [resolvable:$true] %s16_s15 }
   0x4   :  { %s2650_s18 = scalar_lea.hbm %s3862_s1, 2048 }
   0x5   :  { %p2651_p0 = scmp.ne.s32.totalorder %s3862_s1, %s2650_s18  ;;  %p2654_p1 = scmp.lt.u32.totalorder %s2650_s18, %s3862_s1 }
   0x7   :  { %p2656_p2 = pnand %p2654_p1, %p2651_p0 }
   0x9   :  { %2659 = shalt.err (!%p2656_p2)
}
   0xa   :  { %s2660_s23 = scalar_lea.vmem %s29_s13, 2048  ;;  %p2665_p4 = scmp.lt.s32.totalorder %s29_s13, %s29_s13 }
   0xb   :  { %p2661_p3 = scmp.ne.s32.totalorder %s29_s13, %s2660_s23  ;;  %p2666_p5 = scmp.lt.s32.totalorder %s2660_s23, %s2660_s23 }
   0xd   :  { %p2667_p6 = por %p2666_p5, %p2665_p4 }
   0xf   :  { %p2668_p7 = pnand %p2667_p6, %p2661_p3 }
  0x11   :  { %2671 = shalt.err (!%p2668_p7)
}
  0x12   :  { %s2746_s24 = smov 128   ;;  %s2747_s25 = smov 8  }
  0x13   :  { %34 = dma.hbm_to_vmem [thread:$0]  %s3862_s1, 2048, %s29_s13, [#allocation6], %s2746_s24, %s2746_s24, %s2747_s25  }
  0x14   :  { %s2672_s30 = scalar_lea.hbm %s3861_s0, 1024 }
  0x15   :  { %p2673_p8 = scmp.ne.s32.totalorder %s3861_s0, %s2672_s30  ;;  %p2676_p9 = scmp.lt.u32.totalorder %s2672_s30, %s3861_s0 }
  0x17   :  { %p2678_p10 = pnand %p2676_p9, %p2673_p8 }
  0x19   :  { %2681 = shalt.err (!%p2678_p10)
}
  0x1a   :  { %s2682_s8 = scalar_lea.vmem %s2776_s15, 1024  ;;  %p2687_p12 = scmp.lt.s32.totalorder %s2776_s15, %s2776_s15 }
  0x1b   :  { %p2683_p11 = scmp.ne.s32.totalorder %s2776_s15, %s2682_s8  ;;  %p2688_p13 = scmp.lt.s32.totalorder %s2682_s8, %s2682_s8 }
  0x1d   :  { %p2689_p0 = por %p2688_p13, %p2687_p12 }
  0x1f   :  { %p2690_p1 = pnand %p2689_p0, %p2683_p11 }
  0x21   :  { %2693 = shalt.err (!%p2690_p1)
}
  0x22   :  { %22 = dma.hbm_to_vmem [thread:$0]  %s3861_s0, 1024, %s2776_s15, [#allocation3], %s2746_s24, %s2746_s24, %s2747_s25  }
  0x23   :  { %s2748_s10 = smov [#allocation7]   ;;  %s2694_s14 = scalar_lea.hbm %s3863_s2, 16 }
  0x24   :  { %s41_s11 = sshll.u32 %s2748_s10, 4  ;;  %p2695_p2 = scmp.ne.s32.totalorder %s3863_s2, %s2694_s14  ;;  %s42_s11 = int_to_ptr.vmem [resolvable:$true] %s41_s11 }
  0x25   :  { %p2698_p3 = scmp.lt.u32.totalorder %s2694_s14, %s3863_s2 }
  0x27   :  { %p2700_p4 = pnand %p2698_p3, %p2695_p2 }
  0x29   :  { %2703 = shalt.err (!%p2700_p4)
}
  0x2a   :  { %s2704_s20 = scalar_lea.vmem %s42_s11, 16  ;;  %s2708_s0 = scalar_lea.vmem %s42_s11, 32 }
  0x2b   :  { %p2705_p5 = scmp.ne.s32.totalorder %s42_s11, %s2704_s20  ;;  %p2709_p6 = scmp.lt.s32.totalorder %s42_s11, %s42_s11 }
  0x2c   :  { %p2710_p7 = scmp.lt.s32.totalorder %s2708_s0, %s2704_s20 }
  0x2e   :  { %p2711_p8 = por %p2710_p7, %p2709_p6 }
  0x30   :  { %p2712_p9 = pnand %p2711_p8, %p2705_p5 }
  0x32   :  { %2715 = shalt.err (!%p2712_p9)
}
  0x33   :  { %44 = dma.hbm_to_vmem [thread:$0]  %s3863_s2, 16, %s42_s11, [#allocation6]  }
  0x34   :  { %2738 = dma.done.wait [#allocation3], 1024  }
  0x35   :  { %2739 = vsyncadd [#allocation3], 4294966272 }
  0x36   :  { %2740 = dma.done.wait [#allocation6], 2064  }
  0x37   :  { %2741 = vsyncadd [#allocation6], 4294965232  ;;  %v62_v0 = vld [vmem:[#allocation5] sm:$0xff]  ;;  %v63_v1 = vld [vmem:[#allocation5 + $0x8] sm:$0xff]  ;;  %s2755_s2 = smov [#allocation8]  }
  0x38   :  { %v64_v2 = vld [vmem:[#allocation5 + $0x10] sm:$0xff]  ;;  %v86_v3 = vand.u32 4294901760, %v62_v0  ;;  %v89_v4 = vand.u32 4294901760, %v63_v1  ;;  %v65_v5 = vld [vmem:[#allocation5 + $0x18] sm:$0xff]  ;;  %v2825_v7 = vld [vmem:[#allocation5 + $0x20] sm:$0xff]  ;;  %s1880_s22 = sshll.u32 %s2755_s2, 4  ;;  %s1881_s22 = int_to_ptr.vmem [resolvable:$true] %s1880_s22 }
  0x39   :  { %v92_v6 = vand.u32 4294901760, %v64_v2  ;;  %v2827_v8 = vld [vmem:[#allocation5 + $0x28] sm:$0xff]  ;;  %v95_v9 = vand.u32 4294901760, %v65_v5  ;;  %v98_v11 = vand.u32 4294901760, %v2825_v7  ;;  %v2835_v14 = vld [vmem:[#allocation5 + $0x30] sm:$0xff]  ;;  %v2837_v15 = vld [vmem:[#allocation5 + $0x38] sm:$0xff]  ;;  %p2721_p11 = scmp.lt.s32.totalorder %s1881_s22, %s1881_s22 }
  0x3a   :  { %v2829_v10 = vpack.c.bf16 %v89_v4, %v86_v3  ;;  %v101_v12 = vand.u32 4294901760, %v2827_v8  ;;  %v54_v16 = vld [vmem:[#allocation2] sm:$0xff]  ;;  %v104_v19 = vand.u32 4294901760, %v2835_v14  ;;  %v107_v20 = vand.u32 4294901760, %v2837_v15  ;;  %v2855_v22 = vld [vmem:[#allocation5 + $0x48] sm:$0xff]  ;;  %v2873_v29 = vld [vmem:[#allocation5 + $0x50] sm:$0xff] }
  0x3b   :  { %v2833_v13 = vpack.c.bf16 %v95_v9, %v92_v6  ;;  %v2843_v17 = vand.u32 4294901760, %v54_v16  ;;  %v2853_v21 = vld [vmem:[#allocation5 + $0x40] sm:$0xff]  ;;  %v55_v25 = vld [vmem:[#allocation2 + $0x8] sm:$0xff]  ;;  %v113_v28 = vand.u32 4294901760, %v2855_v22  ;;  %v2875_v30 = vld [vmem:[#allocation5 + $0x58] sm:$0xff]  ;;  %v2882_v34 = vsub.f32 %v62_v0, %v86_v3  ;;  %s2716_s23 = scalar_lea.vmem %s1881_s22, 1024 }
  0x3c   :  { %2335 = vmatprep.subr.bf16.mxu1 %v2829_v10  ;;  %2431 = vmatprep.subr.bf16.mxu0 %v2829_v10  ;;  %v2849_v18 = vpack.c.bf16 %v101_v12, %v98_v11  ;;  %v2869_v26 = vpack.c.bf16 %v107_v20, %v104_v19  ;;  %v110_v27 = vand.u32 4294901760, %v2853_v21  ;;  %v2878_v32 = vand.u32 4294901760, %v55_v25  ;;  %v2894_v38 = vld [vmem:[#allocation5 + $0x60] sm:$0xff]  ;;  %v2896_v39 = vld [vmem:[#allocation5 + $0x68] sm:$0xff]  ;;  %v2900_v41 = vld [vmem:[#allocation5 + $0x70] sm:$0xff]  ;;  %p2717_p10 = scmp.ne.s32.totalorder %s1881_s22, %s2716_s23  ;;  %p2722_p12 = scmp.lt.s32.totalorder %s2716_s23, %s2716_s23 }
  0x3d   :  { %2337 = vmatpush3.bf16.msra.mxu1 %v2829_v10  ;;  %2433 = vmatpush3.bf16.msra.mxu0 %v2829_v10  ;;  %v2858_v23 = vsub.f32 %v54_v16, %v2843_v17  ;;  %v116_v36 = vand.u32 4294901760, %v2873_v29  ;;  %v119_v37 = vand.u32 4294901760, %v2875_v30  ;;  %v2898_v40 = vsub.f32 %v63_v1, %v89_v4  ;;  %v2902_v42 = vld [vmem:[#allocation5 + $0x78] sm:$0xff]  ;;  %v56_v45 = vld [vmem:[#allocation2 + $0x10] sm:$0xff]  ;;  %v58_v59 = vld [vmem:[#allocation2 + $0x20] sm:$0xff] }
  0x3e   :  { %2339 = vmatprep.subr.bf16.mxu1 %v2833_v13  ;;  %2435 = vmatprep.subr.bf16.mxu0 %v2833_v13  ;;  %v2890_v35 = vpack.c.bf16 %v113_v28, %v110_v27  ;;  %v2905_v43 = vsub.f32 %v55_v25, %v2878_v32  ;;  %v2907_v44 = vsub.f32 %v64_v2, %v92_v6  ;;  %v3868_v46 = vand.u32 4294901760, %v2894_v38  ;;  %v57_v56 = vld [vmem:[#allocation2 + $0x18] sm:$0xff]  ;;  %v59_v6 = vld [vmem:[#allocation2 + $0x28] sm:$0xff]  ;;  %p2723_p13 = por %p2722_p12, %p2721_p11 }
  0x3f   :  { %3884 = vst [vmem:[#allocation12_spill] sm:$0xff] %v2858_v23  ;;  %v168_v24 = vand.u32 4294901760, %v2858_v23  ;;  %v3867_v47 = vand.u32 4294901760, %v2896_v39  ;;  %v249_v48 = vand.u32 4294901760, %v2882_v34  ;;  %v2914_v49 = vsub.f32 %v65_v5, %v95_v9 }
  0x40   :  { %3885 = vst [vmem:[#allocation13_spill] sm:$0xff] %v2890_v35  ;;  %v2922_v50 = vpack.c.bf16 %v119_v37, %v116_v36  ;;  %v256_v51 = vand.u32 4294901760, %v2898_v40  ;;  %v2926_v52 = vsub.f32 %v2825_v7, %v98_v11  ;;  %v3866_v53 = vand.u32 4294901760, %v2900_v41  ;;  %p2724_p0 = pnand %p2723_p13, %p2717_p10 }
  0x41   :  { %2341 = vmatpush3.bf16.msra.mxu1 %v2833_v13  ;;  %2437 = vmatpush3.bf16.msra.mxu0 %v2833_v13  ;;  %v169_v31 = vsub.f32 %v2858_v23, %v168_v24  ;;  %v3865_v54 = vand.u32 4294901760, %v2902_v42  ;;  %v2930_v55 = vand.u32 4294901760, %v56_v45  ;;  %v3869_v57 = vand.u32 4294901760, %v2905_v43 }
  0x42   :  { %2343 = vmatprep.subr.bf16.mxu1 %v2849_v18  ;;  %2439 = vmatprep.subr.bf16.mxu0 %v2849_v18  ;;  %3886 = vst [vmem:[#allocation14_spill] sm:$0xff] %v2922_v50  ;;  %v263_v58 = vand.u32 4294901760, %v2907_v44  ;;  %v2940_v60 = vpack.c.bf16 %v3867_v47, %v3868_v46  ;;  %v250_v61 = vsub.f32 %v2882_v34, %v249_v48  ;;  %v270_v62 = vand.u32 4294901760, %v2914_v49 }
  0x43   :  { %2234 = vmatprep.mubr.f32.mxu0 %v168_v24  ;;  %v170_v33 = vand.u32 4294901760, %v169_v31  ;;  %v257_v63 = vsub.f32 %v2898_v40, %v256_v51  ;;  %v3870_v0 = vand.u32 4294901760, %v2926_v52  ;;  %v2951_v1 = vsub.f32 %v2827_v8, %v101_v12  ;;  %v60_v12 = vld [vmem:[#allocation2 + $0x30] sm:$0xff] }
  0x44   :  { %3887 = vst [vmem:[#allocation15_spill] sm:$0xff] %v2940_v60  ;;  %v2953_v2 = vand.u32 4294901760, %v57_v56  ;;  %v2959_v3 = vpack.c.bf16 %v3865_v54, %v3866_v53  ;;  %v2962_v4 = vsub.f32 %v56_v45, %v2930_v55  ;;  %v2964_v5 = vand.u32 4294901760, %v58_v59 }
  0x45   :  { %2345 = vmatpush3.bf16.msra.mxu1 %v2849_v18  ;;  %2441 = vmatpush3.bf16.msra.mxu0 %v2849_v18  ;;  %v2966_v7 = vpack.c.bf16 %v256_v51, %v249_v48  ;;  %v179_v8 = vsub.f32 %v2905_v43, %v3869_v57  ;;  %v264_v9 = vsub.f32 %v2907_v44, %v263_v58  ;;  %v251_v16 = vand.u32 4294901760, %v250_v61 }
  0x46   :  { %2347 = vmatprep.subr.bf16.mxu1 %v2869_v26  ;;  %2443 = vmatprep.subr.bf16.mxu0 %v2869_v26  ;;  %3888 = vst [vmem:[#allocation16_spill] sm:$0xff] %v2959_v3  ;;  %3889 = vst [vmem:[#allocation17_spill] sm:$0xff] %v2962_v4  ;;  %v2975_v11 = vsub.f32 %v2835_v14, %v104_v19  ;;  %v271_v24 = vsub.f32 %v2914_v49, %v270_v62  ;;  %v258_v14 = vand.u32 4294901760, %v257_v63 }
  0x47   :  { %2102 = vmatprep.mubr.f32.mxu1 %v170_v33  ;;  %v2983_v25 = vsub.f32 %v2837_v15, %v107_v20  ;;  %v2986_v31 = vsub.f32 %v57_v56, %v2953_v2  ;;  %v2993_v19 = vsub.f32 %v2926_v52, %v3870_v0  ;;  %v284_v33 = vand.u32 4294901760, %v2951_v1 }
  0x48   :  { %v2996_v45 = vand.u32 4294901760, %v59_v6  ;;  %v3001_v15 = vsub.f32 %v2853_v21, %v110_v27  ;;  %v188_v20 = vand.u32 4294901760, %v2962_v4  ;;  %v3005_v48 = vsub.f32 %v58_v59, %v2964_v5 }
  0x49   :  { %2349 = vmatpush3.bf16.msra.mxu1 %v2869_v26  ;;  %2445 = vmatpush3.bf16.msra.mxu0 %v2869_v26  ;;  %3890 = vst [vmem:[#allocation18_spill] sm:$0xff] %v2986_v31  ;;  %v3007_v51 = vand.u32 4294901760, %v60_v12  ;;  %v3009_v56 = vpack.c.bf16 %v270_v62, %v263_v58  ;;  %v291_v61 = vand.u32 4294901760, %v2975_v11  ;;  %v198_v63 = vand.u32 4294901760, %v2986_v31  ;;  %v61_v62 = vld [vmem:[#allocation2 + $0x38] sm:$0xff] }
  0x4a   :  { %2351 = vmatprep.subr.bf16.mxu1 %v2890_v35  ;;  %2447 = vmatprep.subr.bf16.mxu0 %v2890_v35  ;;  %3891 = vst [vmem:[#allocation19_spill] sm:$0xff] %v3005_v48  ;;  %v3014_v54 = vsub.f32 %v59_v6, %v2996_v45  ;;  %v180_v21 = vand.u32 4294901760, %v179_v8  ;;  %v265_v27 = vand.u32 4294901760, %v264_v9  ;;  %v298_v59 = vand.u32 4294901760, %v2983_v25 }
  0x4b   :  { %v3022_v58 = vsub.f32 %v2855_v22, %v113_v28  ;;  %v2366_v6 = vpack.c.bf16 %v258_v14, %v251_v16  ;;  %v272_v53 = vand.u32 4294901760, %v271_v24  ;;  %v279_v47 = vand.u32 4294901760, %v2993_v19 }
  0x4c   :  { %3892 = vst [vmem:[#allocation20_spill] sm:$0xff] %v3014_v54  ;;  %v285_v46 = vsub.f32 %v2951_v1, %v284_v33  ;;  %v189_v9 = vsub.f32 %v2962_v4, %v188_v20  ;;  %v208_v57 = vand.u32 4294901760, %v3005_v48  ;;  %v3032_v22 = vsub.f32 %v60_v12, %v3007_v51 }
  0x4d   :  { %2353 = vmatpush3.bf16.msra.mxu1 %v2890_v35  ;;  %2449 = vmatpush3.bf16.msra.mxu0 %v2890_v35  ;;  %v292_v28 = vsub.f32 %v2975_v11, %v291_v61  ;;  %v199_v0 = vsub.f32 %v2986_v31, %v198_v63  ;;  %v218_v16 = vand.u32 4294901760, %v3014_v54  ;;  %v3037_v24 = vand.u32 4294901760, %v61_v62 }
  0x4e   :  { %2355 = vmatprep.subr.bf16.mxu1 %v2922_v50  ;;  %2451 = vmatprep.subr.bf16.mxu0 %v2922_v50  ;;  %v299_v14 = vsub.f32 %v2983_v25, %v298_v59  ;;  %v312_v19 = vand.u32 4294901760, %v3022_v58  ;;  %v3046_v12 = vsub.f32 %v2873_v29, %v116_v36  ;;  %v3051_v8 = vsub.f32 %v2875_v30, %v119_v37 }
  0x4f   :  { %v2370_v31 = vpack.c.bf16 %v272_v53, %v265_v27  ;;  %v286_v4 = vand.u32 4294901760, %v285_v46  ;;  %v3894_v23 = vand.u32 4294901760, %v3001_v15  ;;  %v190_v36 = vand.u32 4294901760, %v189_v9 }
  0x50   :  { %v209_v35 = vsub.f32 %v3005_v48, %v208_v57  ;;  %v228_v30 = vand.u32 4294901760, %v3032_v22  ;;  %v3895_v37 = vand.u32 4294901760, %v2905_v43  ;;  %v293_v46 = vand.u32 4294901760, %v292_v28 }
  0x51   :  { %2357 = vmatpush3.bf16.msra.mxu1 %v2922_v50  ;;  %2453 = vmatpush3.bf16.msra.mxu0 %v2922_v50  ;;  %v3057_v50 = vsub.f32 %v61_v62, %v3037_v24  ;;  %v306_v29 = vsub.f32 %v3001_v15, %v3894_v23  ;;  %v200_v53 = vand.u32 4294901760, %v199_v0  ;;  %v300_v27 = vand.u32 4294901760, %v299_v14 }
  0x52   :  { %2359 = vmatprep.subr.bf16.mxu1 %v2940_v60  ;;  %2455 = vmatprep.subr.bf16.mxu0 %v2940_v60  ;;  %v313_v23 = vsub.f32 %v3022_v58, %v312_v19  ;;  %v319_v62 = vand.u32 4294901760, %v3046_v12  ;;  %v326_v9 = vand.u32 4294901760, %v3051_v8  ;;  %v3896_v0 = vand.u32 4294901760, %v2894_v38 }
  0x53   :  { %v210_v14 = vand.u32 4294901760, %v209_v35  ;;  %v307_v48 = vand.u32 4294901760, %v306_v29 }
  0x54   :  { %v3076_v28 = vsub.f32 %v2894_v38, %v3896_v0  ;;  %v2378_v38 = vpack.c.bf16 %v300_v27, %v293_v46  ;;  %v314_v0 = vand.u32 4294901760, %v313_v23 }
  0x55   :  { %2361 = vmatpush3.bf16.msra.mxu1 %v2940_v60  ;;  %2457 = vmatpush3.bf16.msra.mxu0 %v2940_v60 }
  0x56   :  { %2363 = vmatprep.subr.bf16.mxu1 %v2959_v3  ;;  %2459 = vmatprep.subr.bf16.mxu0 %v2959_v3  ;;  %v333_v35 = vand.u32 4294901760, %v3076_v28  ;;  %v2382_v46 = vpack.c.bf16 %v314_v0, %v307_v48  ;;  %v2482_v48 = vpack.c.bf16 %v326_v9, %v319_v62 }
  0x58   :  { %v334_v23 = vsub.f32 %v3076_v28, %v333_v35 }
  0x59   :  { %2365 = vmatpush3.bf16.msra.mxu1 %v2959_v3  ;;  %2461 = vmatpush3.bf16.msra.mxu0 %v2959_v3  ;;  %v3893_v3 = vand.u32 4294901760, %v2926_v52 }
  0x5a   :  { %2367 = vmatprep.subr.bf16.mxu1 %v2366_v6  ;;  %2463 = vmatprep.subr.bf16.mxu0 %v2966_v7 }
  0x5b   :  { %v2470_v60 = vpack.c.bf16 %v284_v33, %v3893_v3  ;;  %v219_v3 = vsub.f32 %v3014_v54, %v218_v16  ;;  %v238_v33 = vand.u32 4294901760, %v3057_v50  ;;  %v2474_v54 = vpack.c.bf16 %v298_v59, %v291_v61 }
  0x5c   :  { %2103 = vmatmul.mubr.f32.vlgmr.msra.gmra.mrb[0].mxu1 %v180_v21  ;;  %2235 = vmatmul.mubr.f32.vlgmr.msra.gmra.mrb[0].mxu0 %v3895_v37  ;;  %v2374_v21 = vpack.c.bf16 %v286_v4, %v279_v47  ;;  %v229_v37 = vsub.f32 %v3032_v22, %v228_v30  ;;  %v3898_v61 = vand.u32 4294901760, %v2900_v41 }
  0x5d   :  { %2369 = vmatpush3.bf16.msra.mxu1 %v2366_v6  ;;  %2465 = vmatpush3.bf16.msra.mxu0 %v2966_v7  ;;  %v3897_v6 = vand.u32 4294901760, %v2896_v39  ;;  %v220_v47 = vand.u32 4294901760, %v219_v3  ;;  %v239_v4 = vsub.f32 %v3057_v50, %v238_v33 }
  0x5e   :  { %2371 = vmatprep.subr.bf16.mxu1 %v2370_v31  ;;  %2467 = vmatprep.subr.bf16.mxu0 %v3009_v56  ;;  %v230_v59 = vand.u32 4294901760, %v229_v37 }
  0x5f   :  { %v3081_v7 = vsub.f32 %v2896_v39, %v3897_v6  ;;  %2105 = vmatprep.mubr.f32.mxu1 %v190_v36  ;;  %2237 = vmatprep.mubr.f32.mxu0 %v188_v20  ;;  %v320_v39 = vsub.f32 %v3046_v12, %v319_v62  ;;  %v327_v36 = vsub.f32 %v3051_v8, %v326_v9  ;;  %v240_v29 = vand.u32 4294901760, %v239_v4 }
  0x60   :  { %2106 = vmatmul.mubr.f32.gmra.mrb[2].mxu1 %v200_v53  ;;  %2238 = vmatmul.mubr.f32.gmra.mrb[2].mxu0 %v198_v63  ;;  %v3093_v63 = vsub.f32 %v2900_v41, %v3898_v61  ;;  %v3900_v53 = vand.u32 4294901760, %v3001_v15  ;;  %v2402_v4 = vpack.c.bf16 %v2914_v49, %v2907_v44  ;;  %v3902_v44 = vld [vmem:[#allocation12_spill] sm:$0xff]  ;;  %v3903_v49 = vld [vmem:[#allocation14_spill] sm:$0xff] }
  0x61   :  { %2373 = vmatpush3.bf16.msra.mxu1 %v2370_v31  ;;  %2469 = vmatpush3.bf16.msra.mxu0 %v3009_v56  ;;  %v340_v20 = vand.u32 4294901760, %v3081_v7  ;;  %v3899_v31 = vand.u32 4294901760, %v2902_v42  ;;  %v321_v27 = vand.u32 4294901760, %v320_v39  ;;  %v328_v41 = vand.u32 4294901760, %v327_v36 }
  0x62   :  { %2375 = vmatprep.subr.bf16.mxu1 %v2374_v21  ;;  %2471 = vmatprep.subr.bf16.mxu0 %v2470_v60  ;;  %v2478_v3 = vpack.c.bf16 %v312_v19, %v3900_v53 }
  0x63   :  { %v3098_v56 = vsub.f32 %v2902_v42, %v3899_v31  ;;  %2108 = vmatprep.mubr.f32.mxu1 %v210_v14  ;;  %2240 = vmatprep.mubr.f32.mxu0 %v208_v57  ;;  %v341_v42 = vsub.f32 %v3081_v7, %v340_v20  ;;  %v347_v57 = vand.u32 4294901760, %v3093_v63 }
  0x64   :  { %2109 = vmatmul.mubr.f32.gmra.mrb[4].mxu1 %v220_v47  ;;  %2241 = vmatmul.mubr.f32.gmra.mrb[4].mxu0 %v218_v16  ;;  %v335_v16 = vand.u32 4294901760, %v334_v23  ;;  %v2398_v47 = vpack.c.bf16 %v2898_v40, %v2882_v34  ;;  %v2406_v34 = vpack.c.bf16 %v2951_v1, %v2926_v52  ;;  %v3901_v40 = vld [vmem:[#allocation13_spill] sm:$0xff]  ;;  %v2422_v52 = vpack.c.bf16 %v3081_v7, %v3076_v28 }
  0x65   :  { %2377 = vmatpush3.bf16.msra.mxu1 %v2374_v21  ;;  %2473 = vmatpush3.bf16.msra.mxu0 %v2470_v60  ;;  %v354_v6 = vand.u32 4294901760, %v3098_v56  ;;  %v2386_v60 = vpack.c.bf16 %v328_v41, %v321_v27  ;;  %v342_v19 = vand.u32 4294901760, %v341_v42  ;;  %v348_v21 = vsub.f32 %v3093_v63, %v347_v57 }
  0x66   :  { %2379 = vmatprep.subr.bf16.mxu1 %v2378_v38  ;;  %2475 = vmatprep.subr.bf16.mxu0 %v2474_v54  ;;  %v2426_v1 = vpack.c.bf16 %v3098_v56, %v3093_v63 }
  0x67   :  { %2111 = vmatprep.mubr.f32.mxu1 %v230_v59  ;;  %2243 = vmatprep.mubr.f32.mxu0 %v228_v30  ;;  %v355_v14 = vsub.f32 %v3098_v56, %v354_v6  ;;  %v2390_v30 = vpack.c.bf16 %v342_v19, %v335_v16  ;;  %v2490_v37 = vpack.c.bf16 %v354_v6, %v347_v57 }
  0x68   :  { %2112 = vmatmul.mubr.f32.gmra.mrb[6].mxu1 %v240_v29  ;;  %2244 = vmatmul.mubr.f32.gmra.mrb[6].mxu0 %v238_v33  ;;  %v349_v33 = vand.u32 4294901760, %v348_v21 }
  0x69   :  { %2381 = vmatpush3.bf16.msra.mxu1 %v2378_v38  ;;  %2477 = vmatpush3.bf16.msra.mxu0 %v2474_v54  ;;  %v2486_v54 = vpack.c.bf16 %v340_v20, %v333_v35  ;;  %v356_v62 = vand.u32 4294901760, %v355_v14 }
  0x6a   :  { %2383 = vmatprep.subr.bf16.mxu1 %v2382_v46  ;;  %2479 = vmatprep.subr.bf16.mxu0 %v2478_v3 }
  0x6b   :  { %2146 = vmatprep.mubr.f32.mxu1 %v2843_v17  ;;  %2278 = vmatprep.mubr.f32.mxu0 %v2843_v17  ;;  %v2394_v9 = vpack.c.bf16 %v356_v62, %v349_v33 }
  0x6d   :  { %2385 = vmatpush3.bf16.msra.mxu1 %v2382_v46  ;;  %2481 = vmatpush3.bf16.msra.mxu0 %v2478_v3 }
  0x6e   :  { %2387 = vmatprep.subr.bf16.mxu1 %v2386_v60  ;;  %2483 = vmatprep.subr.bf16.mxu0 %v2482_v48 }
  0x71   :  { %2389 = vmatpush3.bf16.msra.mxu1 %v2386_v60  ;;  %2485 = vmatpush3.bf16.msra.mxu0 %v2482_v48 }
  0x72   :  { %2391 = vmatprep.subr.bf16.mxu1 %v2390_v30  ;;  %2487 = vmatprep.subr.bf16.mxu0 %v2486_v54 }
  0x75   :  { %2393 = vmatpush3.bf16.msra.mxu1 %v2390_v30  ;;  %2489 = vmatpush3.bf16.msra.mxu0 %v2486_v54 }
  0x76   :  { %2395 = vmatprep.subr.bf16.mxu1 %v2394_v9  ;;  %2491 = vmatprep.subr.bf16.mxu0 %v2490_v37 }
  0x79   :  { %2397 = vmatpush3.bf16.msra.mxu1 %v2394_v9  ;;  %2493 = vmatpush3.bf16.msra.mxu0 %v2490_v37 }
  0x7a   :  { %2399 = vmatprep.subr.bf16.mxu1 %v2398_v47  ;;  %2495 = vmatprep.subr.bf16.mxu0 %v2829_v10 }
  0x7c   :  { %2147 = vmatmul.mubr.f32.vlgmr.msra.gmra.mrb[0].mxu1 %v2878_v32  ;;  %2279 = vmatmul.mubr.f32.vlgmr.msra.gmra.mrb[0].mxu0 %v2878_v32 }
  0x7d   :  { %2401 = vmatpush3.bf16.msra.mxu1 %v2398_v47  ;;  %2497 = vmatpush3.bf16.msra.mxu0 %v2829_v10  ;;  %v2410_v10 = vpack.c.bf16 %v2983_v25, %v2975_v11  ;;  %v3906_v11 = vld [vmem:[#allocation17_spill] sm:$0xff]  ;;  %v3907_v25 = vld [vmem:[#allocation18_spill] sm:$0xff] }
  0x7e   :  { %2403 = vmatprep.subr.bf16.mxu1 %v2402_v4  ;;  %2499 = vmatprep.subr.bf16.mxu0 %v2833_v13 }
  0x7f   :  { %2149 = vmatprep.mubr.f32.mxu1 %v2930_v55  ;;  %2281 = vmatprep.mubr.f32.mxu0 %v2930_v55 }
  0x80   :  { %2150 = vmatmul.mubr.f32.gmra.mrb[2].mxu1 %v2953_v2  ;;  %2282 = vmatmul.mubr.f32.gmra.mrb[2].mxu0 %v2953_v2 }
  0x81   :  { %2405 = vmatpush3.bf16.msra.mxu1 %v2402_v4  ;;  %2501 = vmatpush3.bf16.msra.mxu0 %v2833_v13  ;;  %v2414_v13 = vpack.c.bf16 %v3022_v58, %v3001_v15  ;;  %v3908_v15 = vld [vmem:[#allocation19_spill] sm:$0xff]  ;;  %v3909_v58 = vld [vmem:[#allocation20_spill] sm:$0xff] }
  0x82   :  { %2407 = vmatprep.subr.bf16.mxu1 %v2406_v34  ;;  %2503 = vmatprep.subr.bf16.mxu0 %v2849_v18 }
  0x83   :  { %2152 = vmatprep.mubr.f32.mxu1 %v2964_v5  ;;  %2284 = vmatprep.mubr.f32.mxu0 %v2964_v5 }
  0x84   :  { %2153 = vmatmul.mubr.f32.gmra.mrb[4].mxu1 %v2996_v45  ;;  %2285 = vmatmul.mubr.f32.gmra.mrb[4].mxu0 %v2996_v45 }
  0x85   :  { %2409 = vmatpush3.bf16.msra.mxu1 %v2406_v34  ;;  %2505 = vmatpush3.bf16.msra.mxu0 %v2849_v18  ;;  %v2418_v18 = vpack.c.bf16 %v3051_v8, %v3046_v12 }
  0x86   :  { %2411 = vmatprep.subr.bf16.mxu1 %v2410_v10  ;;  %2507 = vmatprep.subr.bf16.mxu0 %v2869_v26 }
  0x87   :  { %2155 = vmatprep.mubr.f32.mxu1 %v3007_v51  ;;  %2287 = vmatprep.mubr.f32.mxu0 %v3007_v51 }
  0x88   :  { %2156 = vmatmul.mubr.f32.gmra.mrb[6].mxu1 %v3037_v24  ;;  %2288 = vmatmul.mubr.f32.gmra.mrb[6].mxu0 %v3037_v24 }
  0x89   :  { %2413 = vmatpush3.bf16.msra.mxu1 %v2410_v10  ;;  %2509 = vmatpush3.bf16.msra.mxu0 %v2869_v26  ;;  %v3904_v26 = vld [vmem:[#allocation15_spill] sm:$0xff] }
  0x8a   :  { %2415 = vmatprep.subr.bf16.mxu1 %v2414_v13  ;;  %2511 = vmatprep.subr.bf16.mxu0 %v3901_v40 }
  0x8b   :  { %2190 = vmatprep.mubr.f32.mxu1 %v3902_v44  ;;  %2322 = vmatprep.mubr.f32.mxu0 %v2843_v17  ;;  %v3905_v17 = vld [vmem:[#allocation16_spill] sm:$0xff]  ;;  %v2749_v44 = vmov 683565275  }
  0x8d   :  { %2417 = vmatpush3.bf16.msra.mxu1 %v2414_v13  ;;  %2513 = vmatpush3.bf16.msra.mxu0 %v3901_v40 }
  0x8e   :  { %2419 = vmatprep.subr.bf16.mxu1 %v2418_v18  ;;  %2515 = vmatprep.subr.bf16.mxu0 %v3903_v49 }
  0x91   :  { %2421 = vmatpush3.bf16.msra.mxu1 %v2418_v18  ;;  %2517 = vmatpush3.bf16.msra.mxu0 %v3903_v49 }
  0x92   :  { %2423 = vmatprep.subr.bf16.mxu1 %v2422_v52  ;;  %2519 = vmatprep.subr.bf16.mxu0 %v3904_v26 }
  0x95   :  { %2425 = vmatpush3.bf16.msra.mxu1 %v2422_v52  ;;  %2521 = vmatpush3.bf16.msra.mxu0 %v3904_v26 }
  0x96   :  { %2427 = vmatprep.subr.bf16.mxu1 %v2426_v1  ;;  %2523 = vmatprep.subr.bf16.mxu0 %v3905_v17 }
  0x99   :  { %2429 = vmatpush3.bf16.msra.mxu1 %v2426_v1  ;;  %2525 = vmatpush3.bf16.msra.mxu0 %v3905_v17  ;;  %v2750_v1 = vmov 2475754826  }
  0x9c   :  { %2191 = vmatmul.mubr.f32.vlgmr.msra.gmra.mrb[0].mxu1 %v2905_v43  ;;  %2323 = vmatmul.mubr.f32.vlgmr.msra.gmra.mrb[0].mxu0 %v2878_v32  ;;  %v3172_v32 = vld [vmem:[#allocation7] ss:$0 sm:$0xff] }
  0x9d   :  { %2193 = vmatprep.mubr.f32.mxu1 %v3906_v11  ;;  %2325 = vmatprep.mubr.f32.mxu0 %v2930_v55  ;;  %v2751_v11 = vmov 2131351028  }
  0xa0   :  { %2194 = vmatmul.mubr.f32.gmra.mrb[2].mxu1 %v3907_v25  ;;  %2326 = vmatmul.mubr.f32.gmra.mrb[2].mxu0 %v2953_v2 }
  0xa1   :  { %2196 = vmatprep.mubr.f32.mxu1 %v3908_v15  ;;  %2328 = vmatprep.mubr.f32.mxu0 %v2964_v5  ;;  %v2752_v15 = vmov 2102212464  }
  0xa4   :  { %2197 = vmatmul.mubr.f32.gmra.mrb[4].mxu1 %v3909_v58  ;;  %2329 = vmatmul.mubr.f32.gmra.mrb[4].mxu0 %v2996_v45 }
  0xa5   :  { %2199 = vmatprep.mubr.f32.mxu1 %v3032_v22  ;;  %2331 = vmatprep.mubr.f32.mxu0 %v3007_v51 }
  0xa8   :  { %2200 = vmatmul.mubr.f32.gmra.mrb[6].mxu1 %v3057_v50  ;;  %2332 = vmatmul.mubr.f32.gmra.mrb[6].mxu0 %v3037_v24 }
 0x16f   :  { %v2192_v43 = vpop.f32.mrb[0].mxu1  ;;  %v2324_v55 = vpop.f32.mrb[0].mxu0 }
 0x170   :  { %v2526_v2 = vadd.f32 %v2192_v43, %v3172_v32  ;;  %v539_v8 = vpop.f32.mrb[1].mxu1  ;;  %v981_v5 = vpop.f32.mrb[1].mxu0  ;;  %v2753_v43 = vmov 920167782  }
 0x171   :  { %v2528_v12 = vadd.f32 %v3172_v32, %v539_v8 }
 0x172   :  { %v2527_v28 = vadd.f32 %v2526_v2, %v2324_v55 }
 0x173   :  { %v2529_v45 = vadd.f32 %v2528_v12, %v981_v5  ;;  %v2195_v7 = vpop.f32.mrb[2].mxu1  ;;  %v2327_v22 = vpop.f32.mrb[2].mxu0 }
 0x174   :  { %v3176_v38 = vmul.f32 30.0, %v2527_v28  ;;  %v2530_v50 = vadd.f32 %v2195_v7, %v3172_v32  ;;  %v553_v51 = vpop.f32.mrb[3].mxu1  ;;  %v993_v24 = vpop.f32.mrb[3].mxu0 }
 0x175   :  { %v3179_v0 = vmul.f32 30.0, %v2529_v45  ;;  %v2532_v39 = vadd.f32 %v3172_v32, %v553_v51  ;;  %v2754_v45 = vmov 1326507024  }
 0x176   :  { %v1139_v36 = vand.u32 2147483647, %v3176_v38  ;;  %v1142_v35 = vand.u32 2139095040, %v3176_v38  ;;  %v2531_v29 = vadd.f32 %v2530_v50, %v2327_v22  ;;  %vm1141_vm13 = vcmp.lt.s32.totalorder %v3176_v38, 0 }
 0x177   :  { %v1035_v20 = vand.u32 2147483647, %v3179_v0  ;;  %v1038_v61 = vand.u32 2139095040, %v3179_v0  ;;  %v3186_v63 = vpop.f32.mrb[4].mxu1  ;;  %v3188_v31 = vpop.f32.mrb[4].mxu0  ;;  %v3196_v27 = vadd.f32 %v2532_v39, %v993_v24  ;;  %vm1037_vm15 = vcmp.lt.s32.totalorder %v3179_v0, 0 }
 0x178   :  { %v1143_v56 = vshrl.u32 %v1142_v35, 23  ;;  %v1146_v59 = vand.u32 8388607, %v1139_v36  ;;  %v3192_v46 = vpop.f32.mrb[5].mxu1  ;;  %v3198_v41 = vpop.f32.mrb[5].mxu0  ;;  %v3200_v42 = vmul.f32 30.0, %v2531_v29 }
 0x179   :  { %v1039_v53 = vshrl.u32 %v1038_v61, 23  ;;  %v1042_v3 = vand.u32 8388607, %v1035_v20  ;;  %vm3297_vm14 = vcmp.le.f32.partialorder %v1139_v36, 0.7853982 }
 0x17a   :  { %v1898_v23 = vadd.s32 4294967169, %v1143_v56  ;;  %v1147_v48 = vor.u32 8388608, %v1146_v59  ;;  %v1347_v14 = vand.u32 2147483647, %v3200_v42  ;;  %v1350_v30 = vand.u32 2139095040, %v3200_v42 }
 0x17b   :  { %v1894_v57 = vadd.s32 4294967169, %v1039_v53  ;;  %v3202_v6 = vpop.f32.mrb[6].mxu1  ;;  %v3204_v60 = vpop.f32.mrb[6].mxu0  ;;  %v1043_v19 = vor.u32 8388608, %v1042_v3 }
 0x17c   :  { %v1149_v16 = vadd.s32 1, %v1898_v23  ;;  %v3208_v54 = vpop.f32.mrb[7].mxu1  ;;  %v3210_v33 = vpop.f32.mrb[7].mxu0  ;;  %v1351_v9 = vshrl.u32 %v1350_v30, 23  ;;  %v3212_v34 = vshll.u32 %v1147_v48, 8 }
 0x17d   :  { %v1045_v21 = vadd.s32 1, %v1894_v57  ;;  %v3216_v13 = vshll.u32 %v1043_v19, 8  ;;  %v3220_v40 = vand.u32 8388607, %v1347_v14 }
 0x17e   :  { %vm1150_vm0 = vcmp.gt.s32.totalorder %v1149_v16, 0  ;;  %v3223_v26 = vadd.s32 4294967169, %v1351_v9 }
 0x17f   :  { %v1151_v62 = vsel %vm1150_vm0, %v1149_v16, 0  ;;  %vm1046_vm1 = vcmp.gt.s32.totalorder %v1045_v21, 0 }
 0x180   :  { %v1152_v37 = vshrl.u32 %v1151_v62, 5  ;;  %v1153_v47 = vand.u32 31, %v1151_v62  ;;  %v1047_v4 = vsel %vm1046_vm1, %v1045_v21, 0 }
 0x181   :  { %v3214_v10 = vshrl.u32 %v1047_v4, 5  ;;  %v1049_v52 = vand.u32 31, %v1047_v4 }
 0x182   :  { %v1154_v18 = vsub.s32 32, %v1153_v47  ;;  %v1156_v49 = vshll.u32 %v2749_v44, %v1153_v47  ;;  %v1159_v17 = vshll.u32 %v2750_v1, %v1153_v47  ;;  %v1162_v25 = vshll.u32 %v2751_v11, %v1153_v47 }
 0x183   :  { %v1165_v58 = vshll.u32 %v2752_v15, %v1153_v47  ;;  %v1168_v55 = vshll.u32 %v2753_v43, %v1153_v47  ;;  %vm1171_vm2 = vcmp.lt.s32.totalorder %v1152_v37, 1  ;;  %vm1172_vm3 = vcmp.lt.s32.totalorder %v1152_v37, 2 }
 0x184   :  { %v1157_v2 = vshrl.u32 %v2750_v1, %v1154_v18  ;;  %v1160_v8 = vshrl.u32 %v2751_v11, %v1154_v18  ;;  %v1163_v5 = vshrl.u32 %v2752_v15, %v1154_v18  ;;  %v1155_v12 = vshrl.u32 %v2749_v44, %v1154_v18 }
 0x185   :  { %v1166_v28 = vshrl.u32 %v2753_v43, %v1154_v18  ;;  %v1169_v7 = vshrl.u32 %v2754_v45, %v1154_v18  ;;  %v1050_v24 = vsub.s32 32, %v1049_v52  ;;  %vm1173_vm4 = vcmp.lt.s32.totalorder %v1152_v37, 3 }
 0x186   :  { %v1158_v22 = vor.u32 %v1157_v2, %v1156_v49  ;;  %v1161_v50 = vor.u32 %v1160_v8, %v1159_v17  ;;  %v1164_v51 = vor.u32 %v1163_v5, %v1162_v25  ;;  %vm1174_vm5 = vcmp.lt.s32.totalorder %v1152_v37, 4 }
 0x187   :  { %v1167_v39 = vor.u32 %v1166_v28, %v1165_v58  ;;  %v1170_v35 = vor.u32 %v1169_v7, %v1168_v55  ;;  %v1052_v57 = vshll.u32 %v2749_v44, %v1049_v52  ;;  %v1053_v19 = vshrl.u32 %v2750_v1, %v1050_v24 }
 0x188   :  { %v1175_v61 = vsel %vm1171_vm2, %v1155_v12, %v1158_v22  ;;  %v1176_v56 = vsel %vm1174_vm5, %v1164_v51, 2102212464  ;;  %v1179_v59 = vsel %vm1171_vm2, %v1158_v22, %v1161_v50  ;;  %v1183_v29 = vsel %vm1171_vm2, %v1161_v50, %v1164_v51 }
 0x189   :  { %v1177_v53 = vsel %vm1173_vm4, %v1161_v50, %v1176_v56  ;;  %v1180_v3 = vsel %vm1174_vm5, %v1167_v39, 920167782  ;;  %v1184_v23 = vsel %vm1174_vm5, %v1170_v35, 1326507024  ;;  %v1055_v21 = vshll.u32 %v2750_v1, %v1049_v52 }
 0x18a   :  { %v1181_v48 = vsel %vm1173_vm4, %v1164_v51, %v1180_v3  ;;  %v1185_v16 = vsel %vm1173_vm4, %v1167_v39, %v1184_v23  ;;  %v1178_v30 = vsel %vm1172_vm3, %v1175_v61, %v1177_v53  ;;  %v1056_v47 = vshrl.u32 %v2751_v11, %v1050_v24 }
 0x18b   :  { %v1182_v62 = vsel %vm1172_vm3, %v1179_v59, %v1181_v48  ;;  %v1186_v9 = vsel %vm1172_vm3, %v1183_v29, %v1185_v16  ;;  %v1054_v25 = vor.u32 %v1053_v19, %v1052_v57  ;;  %v1058_v55 = vshll.u32 %v2751_v11, %v1049_v52 }
 0x18c   :  { %v3246_v4 = vmul.u32.u64.low %v3212_v34, %v1186_v9  ;;  %v3247_v18 = vmul.u32.u64.high %v3212_v34, %v1186_v9, %v3246_v4  ;;  %v3250_v49 = vmul.u32.u64.low %v3212_v34, %v1182_v62  ;;  %v3251_v17 = vmul.u32.u64.high %v3212_v34, %v1182_v62, %v3250_v49 }
 0x18d   :  { %v1057_v58 = vor.u32 %v1056_v47, %v1055_v21  ;;  %v1059_v2 = vshrl.u32 %v2752_v15, %v1050_v24  ;;  %v1051_v8 = vshrl.u32 %v2749_v44, %v1050_v24  ;;  %v1061_v37 = vshll.u32 %v2752_v15, %v1049_v52 }
 0x18e   :  { %v1062_v5 = vshrl.u32 %v2753_v43, %v1050_v24  ;;  %v1065_v12 = vshrl.u32 %v2754_v45, %v1050_v24  ;;  %v1194_v28 = vmul.u32 %v3212_v34, %v1178_v30  ;;  %v1064_v22 = vshll.u32 %v2753_v43, %v1049_v52 }
 0x18f   :  { %v1060_v7 = vor.u32 %v1059_v2, %v1058_v55  ;;  %vm1067_vm6 = vcmp.lt.s32.totalorder %v3214_v10, 1  ;;  %vm1196_vm7 = vc.u32 %v3247_v18, %v3250_v49  ;;  %v1197_v50 = vadd.s32 1, %v3251_v17 }
 0x190   :  { %v1063_v51 = vor.u32 %v1062_v5, %v1061_v37  ;;  %vm1068_vm8 = vcmp.lt.s32.totalorder %v3214_v10, 2  ;;  %v1066_v39 = vor.u32 %v1065_v12, %v1064_v22  ;;  %vm1069_vm9 = vcmp.lt.s32.totalorder %v3214_v10, 3 }
 0x191   :  { %vm1070_vm10 = vcmp.lt.s32.totalorder %v3214_v10, 4  ;;  %v1075_v24 = vsel %vm1067_vm6, %v1054_v25, %v1057_v58  ;;  %v1198_v34 = vsel %vm1196_vm7, %v1197_v50, %v3251_v17  ;;  %v1079_v52 = vsel %vm1067_vm6, %v1057_v58, %v1060_v7 }
 0x192   :  { %v1072_v35 = vsel %vm1070_vm10, %v1060_v7, 2102212464  ;;  %v1076_v61 = vsel %vm1070_vm10, %v1063_v51, 920167782  ;;  %v1199_v56 = vadd.s32 %v1198_v34, %v1194_v28  ;;  %v1071_v59 = vsel %vm1067_vm6, %v1051_v8, %v1054_v25 }
 0x193   :  { %v1077_v29 = vsel %vm1069_vm9, %v1060_v7, %v1076_v61  ;;  %v1080_v53 = vsel %vm1070_vm10, %v1066_v39, 1326507024  ;;  %v1073_v3 = vsel %vm1069_vm9, %v1057_v58, %v1072_v35  ;;  %v1357_v48 = vadd.s32 1, %v3223_v26 }
 0x194   :  { %v1078_v23 = vsel %vm1068_vm8, %v1075_v24, %v1077_v29  ;;  %v1081_v57 = vsel %vm1069_vm9, %v1063_v51, %v1080_v53  ;;  %v1200_v16 = vadd.s32 536870912, %v1199_v56  ;;  %v1074_v4 = vsel %vm1068_vm8, %v1071_v59, %v1073_v3 }
 0x195   :  { %v1082_v19 = vsel %vm1068_vm8, %v1079_v52, %v1081_v57  ;;  %v3274_v21 = vmul.u32.u64.low %v3216_v13, %v1078_v23  ;;  %v3275_v30 = vmul.u32.u64.high %v3216_v13, %v1078_v23, %v3274_v21  ;;  %vm1358_vm11 = vcmp.gt.s32.totalorder %v1357_v48, 0 }
 0x196   :  { %v3278_v62 = vmul.u32.u64.low %v3216_v13, %v1082_v19  ;;  %v3279_v9 = vmul.u32.u64.high %v3216_v13, %v1082_v19, %v3278_v62  ;;  %v1201_v47 = vshrl.u32 %v1200_v16, 30  ;;  %v1359_v17 = vsel %vm1358_vm11, %v1357_v48, 0 }
 0x197   :  { %v3284_v26 = vmul.f32 30.0, %v3196_v27  ;;  %v1361_v25 = vand.u32 31, %v1359_v17  ;;  %v1093_v55 = vadd.s32 1, %v3275_v30  ;;  %v1355_v2 = vor.u32 8388608, %v3220_v40 }
 0x198   :  { %v1202_v58 = vshll.u32 %v1201_v47, 30  ;;  %v1225_v8 = vsub.s32 4, %v1201_v47  ;;  %v1090_v37 = vmul.u32 %v3216_v13, %v1074_v4  ;;  %vm1092_vm12 = vc.u32 %v3279_v9, %v3274_v21 }
 0x199   :  { %v1362_v5 = vsub.s32 32, %v1361_v25  ;;  %v1094_v12 = vsel %vm1092_vm12, %v1093_v55, %v3275_v30  ;;  %v1246_v27 = vand.u32 2139095040, %v3284_v26  ;;  %v3303_v13 = vadd.f32 %v3186_v63, %v3172_v32 }
 0x19a   :  { %v3291_v10 = vsub.s32 %v1199_v56, %v1202_v58  ;;  %v1095_v40 = vadd.s32 %v1094_v12, %v1090_v37  ;;  %v3307_v7 = vadd.f32 %v3172_v32, %v3192_v46  ;;  %v1195_v22 = vadd.s32 %v3250_v49, %v3247_v18 }
 0x19b   :  { %v3311_v51 = vshll.u32 %v1355_v2, 8  ;;  %v1243_v36 = vand.u32 2147483647, %v3284_v26  ;;  %v1226_v39 = vsel %vm1141_vm13, %v1225_v8, %v1201_v47  ;;  %v3316_v34 = vshrl.u32 %v1359_v17, 5 }
 0x19c   :  { %v1205_v50 = vsub.s32 0, %v3291_v10  ;;  %v1096_v24 = vadd.s32 536870912, %v1095_v40  ;;  %v1365_v63 = vshrl.u32 %v2750_v1, %v1362_v5  ;;  %v1368_v46 = vshrl.u32 %v2751_v11, %v1362_v5 }
 0x19d   :  { %v1371_v18 = vshrl.u32 %v2752_v15, %v1362_v5  ;;  %v1247_v49 = vshrl.u32 %v1246_v27, 23  ;;  %v1364_v52 = vshll.u32 %v2749_v44, %v1361_v25  ;;  %v1367_v56 = vshll.u32 %v2750_v1, %v1361_v25 }
 0x19e   :  { %v1899_v35 = vmin.u32 %v1205_v50, %v3291_v10  ;;  %v1097_v61 = vshrl.u32 %v1096_v24, 30  ;;  %v1374_v59 = vshrl.u32 %v2753_v43, %v1362_v5  ;;  %v1228_v53 = vsel %vm3297_vm14, 0, %v1226_v39 }
 0x19f   :  { %v1370_v3 = vshll.u32 %v2751_v11, %v1361_v25  ;;  %v1377_v23 = vshrl.u32 %v2754_v45, %v1362_v5  ;;  %v3330_v57 = vadd.s32 %v3274_v21, %v3279_v9  ;;  %v1366_v16 = vor.u32 %v1365_v63, %v1364_v52 }
 0x1a0   :  { %v1207_v29 = vclz %v1899_v35  ;;  %v1098_v48 = vshll.u32 %v1097_v61, 30  ;;  %v1373_v19 = vshll.u32 %v2752_v15, %v1361_v25  ;;  %v1369_v62 = vor.u32 %v1368_v46, %v1367_v56 }
 0x1a1   :  { %v1372_v47 = vor.u32 %v1371_v18, %v1370_v3  ;;  %v1376_v4 = vshll.u32 %v2753_v43, %v1361_v25  ;;  %v3334_v17 = vadd.s32 3, %v1228_v53  ;;  %v1363_v55 = vshrl.u32 %v2749_v44, %v1362_v5 }
 0x1a2   :  { %v1900_v30 = vadd.s32 4294967294, %v1207_v29  ;;  %v3337_v58 = vsub.s32 %v1095_v40, %v1098_v48  ;;  %v1375_v2 = vor.u32 %v1374_v59, %v1373_v19  ;;  %v1121_v21 = vsub.s32 4, %v1097_v61 }
 0x1a3   :  { %v1378_v9 = vor.u32 %v1377_v23, %v1376_v4  ;;  %vm1379_vm1 = vcmp.lt.s32.totalorder %v3316_v34, 1  ;;  %vm1381_vm2 = vcmp.lt.s32.totalorder %v3316_v34, 3  ;;  %vm1382_vm3 = vcmp.lt.s32.totalorder %v3316_v34, 4 }
 0x1a4   :  { %vm1901_vm0 = vcmp.lt.s32.totalorder %v1900_v30, 0  ;;  %v1101_v37 = vsub.s32 0, %v3337_v58  ;;  %vm3346_vm4 = vcmp.le.f32.partialorder %v1035_v20, 0.7853982  ;;  %v1384_v5 = vsel %vm1382_vm3, %v1372_v47, 2102212464 }
 0x1a5   :  { %v1210_v8 = vsel %vm1901_vm0, 0, %v1900_v30  ;;  %v1387_v40 = vsel %vm1379_vm1, %v1366_v16, %v1369_v62  ;;  %v1388_v24 = vsel %vm1382_vm3, %v1375_v2, 920167782  ;;  %v1391_v63 = vsel %vm1379_vm1, %v1369_v62, %v1372_v47 }
 0x1a6   :  { %v1211_v25 = vsub.s32 32, %v1210_v8  ;;  %v1215_v12 = vsub.s32 4294967266, %v1210_v8  ;;  %v1212_v50 = vshll.u32 %v3291_v10, %v1210_v8  ;;  %v1895_v39 = vmin.u32 %v1101_v37, %v3337_v58 }
 0x1a7   :  { %v1389_v20 = vsel %vm1381_vm2, %v1372_v47, %v1388_v24  ;;  %v1392_v18 = vsel %vm1382_vm3, %v1378_v9, 1326507024  ;;  %vm1380_vm5 = vcmp.lt.s32.totalorder %v3316_v34, 2  ;;  %v1383_v56 = vsel %vm1379_vm1, %v1363_v55, %v1366_v16 }
 0x1a8   :  { %v1213_v35 = vshrl.u32 %v1195_v22, %v1211_v25  ;;  %v1216_v46 = vadd.s32 127, %v1215_v12  ;;  %v1103_v52 = vclz %v1895_v39  ;;  %v1385_v10 = vsel %vm1381_vm2, %v1369_v62, %v1384_v5 }
 0x1a9   :  { %v1390_v53 = vsel %vm1380_vm5, %v1387_v40, %v1389_v20  ;;  %v1393_v22 = vsel %vm1381_vm2, %v1375_v2, %v1392_v18  ;;  %v1122_v47 = vsel %vm1037_vm15, %v1121_v21, %v1097_v61  ;;  %v1386_v55 = vsel %vm1380_vm5, %v1383_v56, %v1385_v10 }
 0x1aa   :  { %v1214_v59 = vor.u32 %v1213_v35, %v1212_v50  ;;  %v1217_v29 = vshll.u32 %v1216_v46, 23  ;;  %v1896_v3 = vadd.s32 4294967294, %v1103_v52  ;;  %v1394_v23 = vsel %vm1380_vm5, %v1391_v63, %v1393_v22 }
 0x1ab   :  { %v3366_v48 = vmul.u32.u64.low %v3311_v51, %v1390_v53  ;;  %v3367_v19 = vmul.u32.u64.high %v3311_v51, %v1390_v53, %v3366_v48  ;;  %v3372_v16 = vmul.u32.u64.low %v3311_v51, %v1394_v23  ;;  %v3373_v4 = vmul.u32.u64.high %v3311_v51, %v1394_v23, %v3372_v16 }
 0x1ac   :  { %v1218_v30 = vor.u32 4788187, %v1217_v29  ;;  %v1221_v62 = vcvt.s32.f32 %v1214_v59  ;;  %vm1897_vm6 = vcmp.lt.s32.totalorder %v1896_v3, 0  ;;  %v1902_v9 = vadd.s32 4294967169, %v1247_v49 }
 0x1ad   :  { %v1106_v2 = vsel %vm1897_vm6, 0, %v1896_v3  ;;  %v2535_v8 = vadd.f32 %v3303_v13, %v3188_v31  ;;  %v3379_v37 = vadd.f32 %v3307_v7, %v3198_v41  ;;  %v1124_v61 = vsel %vm3346_vm4, 0, %v1122_v47 }
 0x1ae   :  { %v1219_v34 = vand.u32 2147483647, %v1218_v30  ;;  %v1107_v25 = vsub.s32 32, %v1106_v2  ;;  %v1111_v12 = vsub.s32 4294967266, %v1106_v2  ;;  %v1405_v21 = vadd.s32 1, %v3367_v19 }
 0x1af   :  { %v1402_v40 = vmul.u32 %v3311_v51, %v1386_v55  ;;  %vm1404_vm7 = vc.u32 %v3373_v4, %v3366_v48  ;;  %v1253_v49 = vadd.s32 1, %v1902_v9  ;;  %v1108_v50 = vshll.u32 %v3337_v58, %v1106_v2 }
 0x1b0   :  { %v1222_v5 = vmul.f32 %v1221_v62, %v1219_v34  ;;  %v1109_v31 = vshrl.u32 %v3330_v57, %v1107_v25  ;;  %v1112_v13 = vadd.s32 127, %v1111_v12  ;;  %v1406_v41 = vsel %vm1404_vm7, %v1405_v21, %v3367_v19 }
 0x1b1   :  { %v1407_v39 = vadd.s32 %v1406_v41, %v1402_v40  ;;  %v1250_v24 = vand.u32 8388607, %v1243_v36  ;;  %vm1254_vm8 = vcmp.gt.s32.totalorder %v1253_v49, 0  ;;  %v1128_v20 = vadd.s32 3, %v1124_v61 }
 0x1b2   :  { %v1223_v7 = vxor.u32 2147483648, %v1222_v5  ;;  %v1110_v63 = vor.u32 %v1109_v31, %v1108_v50  ;;  %v1113_v35 = vshll.u32 %v1112_v13, 23  ;;  %v1255_v46 = vsel %vm1254_vm8, %v1253_v49, 0 }
 0x1b3   :  { %v1408_v18 = vadd.s32 536870912, %v1407_v39  ;;  %v1257_v58 = vand.u32 31, %v1255_v46  ;;  %v3397_v52 = vand.u32 3, %v3334_v17  ;;  %v1251_v59 = vor.u32 8388608, %v1250_v24 }
 0x1b4   :  { %v1224_v51 = vsel %vm1141_vm13, %v1223_v7, %v1222_v5  ;;  %v1114_v56 = vor.u32 4788187, %v1113_v35  ;;  %v1117_v22 = vcvt.s32.f32 %v1110_v63  ;;  %v3401_v3 = vand.u32 3, %v1128_v20 }
 0x1b5   :  { %v1227_v57 = vsel %vm3297_vm14, %v3176_v38, %v1224_v51  ;;  %v3399_v10 = vshrl.u32 %v1408_v18, 30  ;;  %v1258_v29 = vsub.s32 32, %v1257_v58  ;;  %v3405_v28 = vadd.s32 %v3366_v48, %v3373_v4 }
 0x1b6   :  { %2618 = vcosq.f32 %v1227_v57  ;;  %v1115_v53 = vand.u32 2147483647, %v1114_v56  ;;  %vm1238_vm9 = vcmp.eq.s32.totalorder %v3397_v52, 2  ;;  %v3413_v62 = vshll.u32 %v1251_v59, 8 }
 0x1b7   :  { %2620 = vsinq.f32 %v1227_v57  ;;  %v1410_v23 = vshll.u32 %v3399_v10, 30  ;;  %v1261_v17 = vshrl.u32 %v2750_v1, %v1258_v29  ;;  %v1264_v30 = vshrl.u32 %v2751_v11, %v1258_v29 }
 0x1b8   :  { %v1118_v19 = vmul.f32 %v1117_v22, %v1115_v53  ;;  %v1270_v16 = vshrl.u32 %v2753_v43, %v1258_v29  ;;  %v3415_v55 = vmul.f32 30.0, %v2535_v8  ;;  %vm1235_vm10 = vcmp.eq.s32.totalorder %v3397_v52, 0 }
 0x1b9   :  { %v3410_v47 = vsub.s32 %v1407_v39, %v1410_v23  ;;  %v1260_v48 = vshll.u32 %v2749_v44, %v1257_v58  ;;  %v1263_v4 = vshll.u32 %v2750_v1, %v1257_v58  ;;  %v1267_v34 = vshrl.u32 %v2752_v15, %v1258_v29 }
 0x1ba   :  { %v1119_v9 = vxor.u32 2147483648, %v1118_v19  ;;  %vm1234_vm11 = vcmp.lt.s32.totalorder %v3397_v52, 2  ;;  %v3423_v25 = vshrl.u32 %v1255_v46, 5  ;;  %v1266_v12 = vshll.u32 %v2751_v11, %v1257_v58 }
 0x1bb   :  { %v1413_v2 = vsub.s32 0, %v3410_v47  ;;  %v1269_v8 = vshll.u32 %v2752_v15, %v1257_v58  ;;  %vm1231_vm12 = vweird.f32 %v3176_v38  ;;  %v1262_v21 = vor.u32 %v1261_v17, %v1260_v48 }
 0x1bc   :  { %v1120_v61 = vsel %vm1037_vm15, %v1119_v9, %v1118_v19  ;;  %v1265_v5 = vor.u32 %v1264_v30, %v1263_v4  ;;  %v1273_v40 = vshrl.u32 %v2754_v45, %v1258_v29  ;;  %v1272_v13 = vshll.u32 %v2753_v43, %v1257_v58 }
 0x1bd   :  { %v1123_v49 = vsel %vm3346_vm4, %v3179_v0, %v1120_v61  ;;  %v1907_v50 = vmin.u32 %v1413_v2, %v3410_v47  ;;  %v1271_v31 = vor.u32 %v1270_v16, %v1269_v8  ;;  %v1433_v41 = vsub.s32 4, %v3399_v10 }
 0x1be   :  { %2622 = vcosq.f32 %v1123_v49  ;;  %v1259_v7 = vshrl.u32 %v2749_v44, %v1258_v29  ;;  %v1268_v39 = vor.u32 %v1267_v34, %v1266_v12  ;;  %vm1349_vm13 = vcmp.lt.s32.totalorder %v3200_v42, 0 }
 0x1bf   :  { %2624 = vsinq.f32 %v1123_v49  ;;  %v1415_v63 = vclz %v1907_v50  ;;  %v1274_v35 = vor.u32 %v1273_v40, %v1272_v13  ;;  %vm1275_vm14 = vcmp.lt.s32.totalorder %v3423_v25, 1 }
 0x1c0   :  { %v2619_v24 = vpop.eup %2618  ;;  %vm1276_vm15 = vcmp.lt.s32.totalorder %v3423_v25, 2  ;;  %vm1278_vm0 = vcmp.lt.s32.totalorder %v3423_v25, 4  ;;  %v1283_v51 = vsel %vm1275_vm14, %v1262_v21, %v1265_v5  ;;  %vm1277_vm1 = vcmp.lt.s32.totalorder %v3423_v25, 3 }
 0x1c1   :  { %v2621_v27 = vpop.eup %2620  ;;  %v1239_v46 = vxor.u32 2147483648, %v2619_v24  ;;  %v1908_v18 = vadd.s32 4294967294, %v1415_v63  ;;  %v1284_v58 = vsel %vm1278_vm0, %v1271_v31, 920167782  ;;  %vm3449_vm2 = vcmp.le.f32.partialorder %v1347_v14, 0.7853982 }
 0x1c2   :  { %v1236_v20 = vxor.u32 2147483648, %v2621_v27  ;;  %v1280_v59 = vsel %vm1278_vm0, %v1268_v39, 2102212464  ;;  %v1285_v29 = vsel %vm1277_vm1, %v1268_v39, %v1284_v58  ;;  %v1287_v53 = vsel %vm1275_vm14, %v1265_v5, %v1268_v39 }
 0x1c3   :  { %v1240_v57 = vsel %vm1238_vm9, %v1239_v46, %v2621_v27  ;;  %vm1909_vm3 = vcmp.lt.s32.totalorder %v1908_v18, 0  ;;  %v1286_v23 = vsel %vm1276_vm15, %v1283_v51, %v1285_v29  ;;  %v1288_v19 = vsel %vm1278_vm0, %v1274_v35, 1326507024 }
 0x1c4   :  { %v1237_v22 = vsel %vm1235_vm10, %v2619_v24, %v1236_v20  ;;  %vm1130_vm4 = vcmp.lt.s32.totalorder %v3401_v3, 2  ;;  %v1418_v17 = vsel %vm1909_vm3, 0, %v1908_v18  ;;  %v1279_v30 = vsel %vm1275_vm14, %v1259_v7, %v1262_v21 }
 0x1c5   :  { %v1241_v14 = vsel %vm1234_vm11, %v1237_v22, %v1240_v57  ;;  %v1289_v16 = vsel %vm1277_vm1, %v1271_v31, %v1288_v19  ;;  %vm1127_vm5 = vweird.f32 %v3179_v0  ;;  %v1419_v48 = vsub.s32 32, %v1418_v17 }
 0x1c6   :  { %v1242_v9 = vsel %vm1231_vm12, nan, %v1241_v14  ;;  %v1423_v4 = vsub.s32 4294967266, %v1418_v17  ;;  %v1281_v52 = vsel %vm1277_vm1, %v1265_v5, %v1280_v59  ;;  %v1420_v34 = vshll.u32 %v3410_v47, %v1418_v17 }
 0x1c7   :  { %1868 = vst [vmem:[#allocation8 + $0x8] sm:$0xff] %v1242_v9  ;;  %v1290_v2 = vsel %vm1276_vm15, %v1287_v53, %v1289_v16  ;;  %v3477_v12 = vmul.u32.u64.low %v3413_v62, %v1286_v23  ;;  %v3478_v8 = vmul.u32.u64.high %v3413_v62, %v1286_v23, %v3477_v12  ;;  %v1421_v38 = vshrl.u32 %v3405_v28, %v1419_v48 }
 0x1c8   :  { %v1424_v61 = vadd.s32 127, %v1423_v4  ;;  %v3482_v21 = vmul.u32.u64.low %v3413_v62, %v1290_v2  ;;  %v3483_v40 = vmul.u32.u64.high %v3413_v62, %v1290_v2, %v3482_v21  ;;  %v2623_v49 = vpop.eup %2622  ;;  %vm1131_vm6 = vcmp.eq.s32.totalorder %v3401_v3, 0 }
 0x1c9   :  { %vm1134_vm7 = vcmp.eq.s32.totalorder %v3401_v3, 2  ;;  %v1434_v47 = vsel %vm1349_vm13, %v1433_v41, %v3399_v10  ;;  %v1558_v5 = vand.u32 2139095040, %v3415_v55  ;;  %v2625_v50 = vpop.eup %2624  ;;  %v1135_v31 = vxor.u32 2147483648, %v2623_v49 }
 0x1ca   :  { %v1422_v13 = vor.u32 %v1421_v38, %v1420_v34  ;;  %v1425_v28 = vshll.u32 %v1424_v61, 23  ;;  %v1282_v7 = vsel %vm1276_vm15, %v1279_v30, %v1281_v52  ;;  %v1132_v39 = vxor.u32 2147483648, %v2625_v50 }
 0x1cb   :  { %v1301_v24 = vadd.s32 1, %v3478_v8  ;;  %v1559_v63 = vshrl.u32 %v1558_v5, 23  ;;  %v3495_v35 = vmul.f32 30.0, %v3379_v37  ;;  %v1136_v27 = vsel %vm1134_vm7, %v1135_v31, %v2625_v50 }
 0x1cc   :  { %v1426_v46 = vor.u32 4788187, %v1425_v28  ;;  %v1436_v10 = vsel %vm3449_vm2, 0, %v1434_v47  ;;  %v1555_v41 = vand.u32 2147483647, %v3415_v55  ;;  %v1133_v51 = vsel %vm1131_vm6, %v2623_v49, %v1132_v39 }
 0x1cd   :  { %v1298_v25 = vmul.u32 %v3413_v62, %v1282_v7  ;;  %vm1300_vm8 = vc.u32 %v3483_v40, %v3477_v12  ;;  %v1914_v20 = vadd.s32 4294967169, %v1559_v63  ;;  %v1137_v18 = vsel %vm1130_vm4, %v1133_v51, %v1136_v27 }
 0x1ce   :  { %v1427_v37 = vand.u32 2147483647, %v1426_v46  ;;  %v1429_v58 = vcvt.s32.f32 %v1422_v13  ;;  %v1302_v57 = vsel %vm1300_vm8, %v1301_v24, %v3478_v8  ;;  %v1138_v59 = vsel %vm1127_vm5, nan, %v1137_v18 }
 0x1cf   :  { %v1440_v29 = vadd.s32 3, %v1436_v10  ;;  %v1303_v53 = vadd.s32 %v1302_v57, %v1298_v25  ;;  %v1565_v22 = vadd.s32 1, %v1914_v20  ;;  %1867 = vst [vmem:[#allocation8] sm:$0xff] %v1138_v59  ;;  %vm1245_vm9 = vcmp.lt.s32.totalorder %v3284_v26, 0 }
 0x1d0   :  { %v1430_v23 = vmul.f32 %v1429_v58, %v1427_v37  ;;  %v1562_v62 = vand.u32 8388607, %v1555_v41  ;;  %v2538_v3 = vadd.f32 %v3202_v6, %v3172_v32  ;;  %v2540_v14 = vadd.f32 %v3172_v32, %v3208_v54 }
 0x1d1   :  { %v1304_v19 = vadd.s32 536870912, %v1303_v53  ;;  %vm1566_vm10 = vcmp.gt.s32.totalorder %v1565_v22, 0  ;;  %v1451_v30 = vand.u32 2147483647, %v3495_v35  ;;  %v1454_v16 = vand.u32 2139095040, %v3495_v35 }
 0x1d2   :  { %v1431_v0 = vxor.u32 2147483648, %v1430_v23  ;;  %v1567_v17 = vsel %vm1566_vm10, %v1565_v22, 0  ;;  %v3518_v9 = vand.u32 3, %v1440_v29  ;;  %vm3522_vm11 = vcmp.le.f32.partialorder %v1243_v36, 0.7853982 }
 0x1d3   :  { %v1305_v4 = vshrl.u32 %v1304_v19, 30  ;;  %v1569_v52 = vand.u32 31, %v1567_v17  ;;  %v3527_v6 = vadd.f32 %v2538_v3, %v3204_v60  ;;  %v3532_v54 = vadd.s32 %v3477_v12, %v3483_v40 }
 0x1d4   :  { %v1432_v32 = vsel %vm1349_vm13, %v1431_v0, %v1430_v23  ;;  %v1563_v34 = vor.u32 8388608, %v1562_v62  ;;  %v3535_v2 = vadd.f32 %v2540_v14, %v3210_v33  ;;  %v1568_v60 = vshrl.u32 %v1567_v17, 5 }
 0x1d5   :  { %v1435_v36 = vsel %vm3449_vm2, %v3200_v42, %v1432_v32  ;;  %v1306_v8 = vshll.u32 %v1305_v4, 30  ;;  %v1329_v38 = vsub.s32 4, %v1305_v4  ;;  %v1570_v61 = vsub.s32 32, %v1569_v52 }
 0x1d6   :  { %2626 = vcosq.f32 %v1435_v36  ;;  %v1455_v21 = vshrl.u32 %v1454_v16, 23  ;;  %v3542_v49 = vand.u32 8388607, %v1451_v30  ;;  %v1572_v33 = vshll.u32 %v2749_v44, %v1569_v52 }
 0x1d7   :  { %2628 = vsinq.f32 %v1435_v36  ;;  %v3544_v12 = vsub.s32 %v1303_v53, %v1306_v8  ;;  %v1575_v40 = vshll.u32 %v2750_v1, %v1569_v52  ;;  %v1573_v56 = vshrl.u32 %v2750_v1, %v1570_v61 }
 0x1d8   :  { %v1576_v47 = vshrl.u32 %v2751_v11, %v1570_v61  ;;  %v1578_v5 = vshll.u32 %v2751_v11, %v1569_v52  ;;  %v1579_v50 = vshrl.u32 %v2752_v15, %v1570_v61  ;;  %v3555_v13 = vsel %vm1245_vm9, %v1329_v38, %v1305_v4 }
 0x1d9   :  { %v1309_v31 = vsub.s32 0, %v3544_v12  ;;  %v1581_v28 = vshll.u32 %v2752_v15, %v1569_v52  ;;  %v1582_v7 = vshrl.u32 %v2753_v43, %v1570_v61  ;;  %vm1446_vm12 = vcmp.eq.s32.totalorder %v3518_v9, 2 }
 0x1da   :  { %v1574_v39 = vor.u32 %v1573_v56, %v1572_v33  ;;  %v1577_v24 = vor.u32 %v1576_v47, %v1575_v40  ;;  %v1580_v63 = vor.u32 %v1579_v50, %v1578_v5  ;;  %v3560_v27 = vshll.u32 %v1563_v34, 8 }
 0x1db   :  { %vm1443_vm13 = vcmp.eq.s32.totalorder %v3518_v9, 0  ;;  %v1903_v46 = vmin.u32 %v1309_v31, %v3544_v12  ;;  %v1583_v10 = vor.u32 %v1582_v7, %v1581_v28  ;;  %v1585_v51 = vshrl.u32 %v2754_v45, %v1570_v61 }
 0x1dc   :  { %v1459_v25 = vor.u32 8388608, %v3542_v49  ;;  %vm1442_vm14 = vcmp.lt.s32.totalorder %v3518_v9, 2  ;;  %v1332_v20 = vsel %vm3522_vm11, 0, %v3555_v13  ;;  %v1571_v18 = vshrl.u32 %v2749_v44, %v1570_v61 }
 0x1dd   :  { %v1584_v37 = vshll.u32 %v2753_v43, %v1569_v52  ;;  %v1910_v58 = vadd.s32 4294967169, %v1455_v21  ;;  %vm1439_vm15 = vweird.f32 %v3200_v42  ;;  %v1311_v57 = vclz %v1903_v46 }
 0x1de   :  { %vm1587_vm0 = vcmp.lt.s32.totalorder %v1568_v60, 1  ;;  %vm1589_vm1 = vcmp.lt.s32.totalorder %v1568_v60, 3  ;;  %vm1590_vm2 = vcmp.lt.s32.totalorder %v1568_v60, 4  ;;  %vm1588_vm3 = vcmp.lt.s32.totalorder %v1568_v60, 2 }
 0x1df   :  { %v1586_v59 = vor.u32 %v1585_v51, %v1584_v37  ;;  %v1591_v29 = vsel %vm1587_vm0, %v1571_v18, %v1574_v39  ;;  %v1592_v53 = vsel %vm1590_vm2, %v1580_v63, 2102212464  ;;  %v1595_v22 = vsel %vm1587_vm0, %v1574_v39, %v1577_v24 }
 0x1e0   :  { %v1904_v23 = vadd.s32 4294967294, %v1311_v57  ;;  %v1593_v62 = vsel %vm1589_vm1, %v1577_v24, %v1592_v53  ;;  %v1596_v19 = vsel %vm1590_vm2, %v1583_v10, 920167782  ;;  %v1599_v3 = vsel %vm1587_vm0, %v1577_v24, %v1580_v63  ;;  %v2627_v14 = vpop.eup %2626 }
 0x1e1   :  { %v1597_v0 = vsel %vm1589_vm1, %v1580_v63, %v1596_v19  ;;  %v1600_v17 = vsel %vm1590_vm2, %v1586_v59, 1326507024  ;;  %v1461_v16 = vadd.s32 1, %v1910_v58  ;;  %v2629_v4 = vpop.eup %2628  ;;  %v1447_v52 = vxor.u32 2147483648, %v2627_v14 }
 0x1e2   :  { %vm1905_vm4 = vcmp.lt.s32.totalorder %v1904_v23, 0  ;;  %v1594_v32 = vsel %vm1588_vm3, %v1591_v29, %v1593_v62  ;;  %v1601_v34 = vsel %vm1589_vm1, %v1583_v10, %v1600_v17  ;;  %v1444_v36 = vxor.u32 2147483648, %v2629_v4 }
 0x1e3   :  { %v1314_v8 = vsel %vm1905_vm4, 0, %v1904_v23  ;;  %v1598_v38 = vsel %vm1588_vm3, %v1595_v22, %v1597_v0  ;;  %v1602_v61 = vsel %vm1588_vm3, %v1599_v3, %v1601_v34  ;;  %v1448_v21 = vsel %vm1446_vm12, %v1447_v52, %v2629_v4 }
 0x1e4   :  { %v1315_v49 = vsub.s32 32, %v1314_v8  ;;  %v1316_v33 = vshll.u32 %v3544_v12, %v1314_v8  ;;  %v1319_v40 = vsub.s32 4294967266, %v1314_v8  ;;  %v1445_v56 = vsel %vm1443_vm13, %v2627_v14, %v1444_v36 }
 0x1e5   :  { %v3582_v47 = vmul.u32.u64.low %v3560_v27, %v1602_v61  ;;  %v3583_v5 = vmul.u32.u64.high %v3560_v27, %v1602_v61, %v3582_v47  ;;  %vm1462_vm5 = vcmp.gt.s32.totalorder %v1461_v16, 0  ;;  %v1449_v60 = vsel %vm1442_vm14, %v1445_v56, %v1448_v21 }
 0x1e6   :  { %v1317_v50 = vshrl.u32 %v3532_v54, %v1315_v49  ;;  %v1320_v31 = vadd.s32 127, %v1319_v40  ;;  %v1463_v13 = vsel %vm1462_vm5, %v1461_v16, 0  ;;  %v1450_v28 = vsel %vm1439_vm15, nan, %v1449_v60 }
 0x1e7   :  { %v3591_v12 = vmul.u32.u64.low %v3560_v27, %v1598_v38  ;;  %v3592_v7 = vmul.u32.u64.high %v3560_v27, %v1598_v38, %v3591_v12  ;;  %1870 = vst [vmem:[#allocation8 + $0x18] sm:$0xff] %v1450_v28  ;;  %v1465_v63 = vand.u32 31, %v1463_v13  ;;  %v1336_v46 = vadd.s32 3, %v1332_v20 }
 0x1e8   :  { %v1318_v39 = vor.u32 %v1317_v50, %v1316_v33  ;;  %v1321_v24 = vshll.u32 %v1320_v31, 23  ;;  %v1610_v9 = vmul.u32 %v3560_v27, %v1594_v32  ;;  %v1464_v10 = vshrl.u32 %v1463_v13, 5 }
 0x1e9   :  { %v3596_v51 = vshll.u32 %v1459_v25, 8  ;;  %vm1612_vm6 = vc.u32 %v3583_v5, %v3591_v12  ;;  %v1466_v42 = vsub.s32 32, %v1465_v63  ;;  %v3601_v18 = vmul.f32 30.0, %v3527_v6 }
 0x1ea   :  { %v1322_v54 = vor.u32 4788187, %v1321_v24  ;;  %v1325_v37 = vcvt.s32.f32 %v1318_v39  ;;  %v1613_v58 = vadd.s32 1, %v3592_v7  ;;  %v1468_v57 = vshll.u32 %v2749_v44, %v1465_v63 }
 0x1eb   :  { %v1471_v20 = vshll.u32 %v2750_v1, %v1465_v63  ;;  %v1469_v27 = vshrl.u32 %v2750_v1, %v1466_v42  ;;  %v1472_v25 = vshrl.u32 %v2751_v11, %v1466_v42  ;;  %v1474_v29 = vshll.u32 %v2751_v11, %v1465_v63 }
 0x1ec   :  { %v1323_v59 = vand.u32 2147483647, %v1322_v54  ;;  %v1614_v53 = vsel %vm1612_vm6, %v1613_v58, %v3592_v7  ;;  %v1475_v22 = vshrl.u32 %v2752_v15, %v1466_v42  ;;  %v1477_v6 = vshll.u32 %v2752_v15, %v1465_v63 }
 0x1ed   :  { %v1478_v23 = vshrl.u32 %v2753_v43, %v1466_v42  ;;  %v1615_v19 = vadd.s32 %v1614_v53, %v1610_v9  ;;  %v1470_v3 = vor.u32 %v1469_v27, %v1468_v57  ;;  %v1473_v14 = vor.u32 %v1472_v25, %v1471_v20 }
 0x1ee   :  { %v1326_v62 = vmul.f32 %v1325_v37, %v1323_v59  ;;  %v1476_v0 = vor.u32 %v1475_v22, %v1474_v29  ;;  %v1480_v16 = vshll.u32 %v2753_v43, %v1465_v63  ;;  %v1481_v4 = vshrl.u32 %v2754_v45, %v1466_v42 }
 0x1ef   :  { %v1479_v17 = vor.u32 %v1478_v23, %v1477_v6  ;;  %v1616_v32 = vadd.s32 536870912, %v1615_v19  ;;  %vm1483_vm7 = vcmp.lt.s32.totalorder %v1464_v10, 1  ;;  %vm1486_vm8 = vcmp.lt.s32.totalorder %v1464_v10, 4 }
 0x1f0   :  { %v1327_v52 = vxor.u32 2147483648, %v1326_v62  ;;  %v1482_v34 = vor.u32 %v1481_v4, %v1480_v16  ;;  %vm1485_vm10 = vcmp.lt.s32.totalorder %v1464_v10, 3  ;;  %v1491_v36 = vsel %vm1483_vm7, %v1470_v3, %v1473_v14 }
 0x1f1   :  { %v1492_v8 = vsel %vm1486_vm8, %v1479_v17, 920167782  ;;  %v1617_v61 = vshrl.u32 %v1616_v32, 30  ;;  %vm1484_vm12 = vcmp.lt.s32.totalorder %v1464_v10, 2  ;;  %v1488_v33 = vsel %vm1486_vm8, %v1476_v0, 2102212464 }
 0x1f2   :  { %v1328_v38 = vsel %vm1245_vm9, %v1327_v52, %v1326_v62  ;;  %v1493_v21 = vsel %vm1485_vm10, %v1476_v0, %v1492_v8  ;;  %v1495_v56 = vsel %vm1483_vm7, %v1473_v14, %v1476_v0  ;;  %v1467_v60 = vshrl.u32 %v2749_v44, %v1466_v42 }
 0x1f3   :  { %v1331_v49 = vsel %vm3522_vm11, %v3284_v26, %v1328_v38  ;;  %v1494_v40 = vsel %vm1484_vm12, %v1491_v36, %v1493_v21  ;;  %v1618_v47 = vshll.u32 %v1617_v61, 30  ;;  %v1496_v50 = vsel %vm1486_vm8, %v1482_v34, 1326507024 }
 0x1f4   :  { %2630 = vcosq.f32 %v1331_v49  ;;  %v1497_v31 = vsel %vm1485_vm10, %v1479_v17, %v1496_v50  ;;  %v3630_v13 = vmul.u32.u64.low %v3596_v51, %v1494_v40  ;;  %v3631_v28 = vmul.u32.u64.high %v3596_v51, %v1494_v40, %v3630_v13 }
 0x1f5   :  { %2632 = vsinq.f32 %v1331_v49  ;;  %v1619_v48 = vsub.s32 %v1615_v19, %v1618_v47  ;;  %v1487_v7 = vsel %vm1483_vm7, %v1467_v60, %v1470_v3  ;;  %v1489_v39 = vsel %vm1485_vm10, %v1473_v14, %v1488_v33 }
 0x1f6   :  { %v1498_v24 = vsel %vm1484_vm12, %v1495_v56, %v1497_v31  ;;  %v1641_v63 = vsub.s32 4, %v1617_v61  ;;  %v1766_v37 = vand.u32 2139095040, %v3601_v18  ;;  %v1337_v58 = vand.u32 3, %v1336_v46 }
 0x1f7   :  { %v3638_v9 = vmul.u32.u64.low %v3596_v51, %v1498_v24  ;;  %v3639_v54 = vmul.u32.u64.high %v3596_v51, %v1498_v24, %v3638_v9  ;;  %v1621_v42 = vsub.s32 0, %v1619_v48  ;;  %v1490_v57 = vsel %vm1484_vm12, %v1487_v7, %v1489_v39 }
 0x1f8   :  { %v1509_v20 = vadd.s32 1, %v3631_v28  ;;  %vm1557_vm9 = vcmp.lt.s32.totalorder %v3415_v55, 0  ;;  %v1763_v27 = vand.u32 2147483647, %v3601_v18  ;;  %v1767_v25 = vshrl.u32 %v1766_v37, 23 }
 0x1f9   :  { %v1915_v59 = vmin.u32 %v1621_v42, %v1619_v48  ;;  %v1642_v29 = vsel %vm1557_vm9, %v1641_v63, %v1617_v61  ;;  %vm1508_vm11 = vc.u32 %v3639_v54, %v3630_v13  ;;  %v3651_v53 = vmul.f32 30.0, %v3535_v2 }
 0x1fa   :  { %vm1335_vm13 = vweird.f32 %v3284_v26  ;;  %vm3656_vm14 = vcmp.le.f32.partialorder %v1555_v41, 0.7853982  ;;  %v1506_v22 = vmul.u32 %v3596_v51, %v1490_v57  ;;  %vm1338_vm15 = vcmp.lt.s32.totalorder %v1337_v58, 2 }
 0x1fb   :  { %v1623_v10 = vclz %v1915_v59  ;;  %vm1339_vm0 = vcmp.eq.s32.totalorder %v1337_v58, 0  ;;  %v1510_v6 = vsel %vm1508_vm11, %v1509_v20, %v3631_v28  ;;  %v1922_v23 = vadd.s32 4294967169, %v1767_v25 }
 0x1fc   :  { %v1644_v2 = vsel %vm3656_vm14, 0, %v1642_v29  ;;  %v1511_v3 = vadd.s32 %v1510_v6, %v1506_v22  ;;  %v1770_v41 = vand.u32 8388607, %v1763_v27  ;;  %vm1342_vm1 = vcmp.eq.s32.totalorder %v1337_v58, 2 }
 0x1fd   :  { %v1916_v19 = vadd.s32 4294967294, %v1623_v10  ;;  %v1773_v17 = vadd.s32 1, %v1922_v23  ;;  %v1662_v51 = vand.u32 2139095040, %v3651_v53  ;;  %v1611_v4 = vadd.s32 %v3591_v12, %v3583_v5 }
 0x1fe   :  { %v2631_v62 = vpop.eup %2630  ;;  %v1512_v52 = vadd.s32 536870912, %v1511_v3  ;;  %v1648_v36 = vadd.s32 3, %v1644_v2  ;;  %v1771_v21 = vor.u32 8388608, %v1770_v41  ;;  %v1507_v24 = vadd.s32 %v3630_v13, %v3639_v54 }
 0x1ff   :  { %v2633_v14 = vpop.eup %2632  ;;  %v1343_v0 = vxor.u32 2147483648, %v2631_v62  ;;  %vm1917_vm2 = vcmp.lt.s32.totalorder %v1916_v19, 0  ;;  %vm1774_vm3 = vcmp.gt.s32.totalorder %v1773_v17, 0  ;;  %v1663_v56 = vshrl.u32 %v1662_v51, 23 }
 0x200   :  { %v1340_v16 = vxor.u32 2147483648, %v2633_v14  ;;  %v1626_v34 = vsel %vm1917_vm2, 0, %v1916_v19  ;;  %v3671_v33 = vshrl.u32 %v1512_v52, 30  ;;  %v1775_v40 = vsel %vm1774_vm3, %v1773_v17, 0 }
 0x201   :  { %v1344_v32 = vsel %vm1342_vm1, %v1343_v0, %v2633_v14  ;;  %v1627_v38 = vsub.s32 32, %v1626_v34  ;;  %v1631_v61 = vsub.s32 4294967266, %v1626_v34  ;;  %v1628_v12 = vshll.u32 %v1619_v48, %v1626_v34 }
 0x202   :  { %v1341_v8 = vsel %vm1339_vm0, %v2631_v62, %v1340_v16  ;;  %v1514_v50 = vshll.u32 %v3671_v33, 30  ;;  %v1777_v31 = vand.u32 31, %v1775_v40  ;;  %v3676_v39 = vand.u32 3, %v1648_v36 }
 0x203   :  { %v1345_v49 = vsel %vm1338_vm15, %v1341_v8, %v1344_v32  ;;  %v1629_v47 = vshrl.u32 %v1611_v4, %v1627_v38  ;;  %v1632_v60 = vadd.s32 127, %v1631_v61  ;;  %v1918_v42 = vadd.s32 4294967169, %v1663_v56 }
 0x204   :  { %v1346_v5 = vsel %vm1335_vm13, nan, %v1345_v49  ;;  %v3680_v63 = vsub.s32 %v1511_v3, %v1514_v50  ;;  %v1778_v9 = vsub.s32 32, %v1777_v31  ;;  %v3682_v37 = vshrl.u32 %v1775_v40, 5 }
 0x205   :  { %1869 = vst [vmem:[#allocation8 + $0x10] sm:$0xff] %v1346_v5  ;;  %v1630_v28 = vor.u32 %v1629_v47, %v1628_v12  ;;  %v1633_v7 = vshll.u32 %v1632_v60, 23  ;;  %v3684_v48 = vshll.u32 %v1771_v21, 8  ;;  %v1659_v58 = vand.u32 2147483647, %v3651_v53 }
 0x206   :  { %v1517_v20 = vsub.s32 0, %v3680_v63  ;;  %v1537_v59 = vsub.s32 4, %v3671_v33  ;;  %v1781_v25 = vshrl.u32 %v2750_v1, %v1778_v9  ;;  %v1784_v13 = vshrl.u32 %v2751_v11, %v1778_v9 }
 0x207   :  { %v1634_v26 = vor.u32 4788187, %v1633_v7  ;;  %v1637_v57 = vcvt.s32.f32 %v1630_v28  ;;  %v1786_v54 = vshll.u32 %v2751_v11, %v1777_v31  ;;  %v1787_v10 = vshrl.u32 %v2752_v15, %v1778_v9 }
 0x208   :  { %v1911_v22 = vmin.u32 %v1517_v20, %v3680_v63  ;;  %v1780_v6 = vshll.u32 %v2749_v44, %v1777_v31  ;;  %v1783_v23 = vshll.u32 %v2750_v1, %v1777_v31  ;;  %v1669_v62 = vadd.s32 1, %v1918_v42 }
 0x209   :  { %v1635_v29 = vand.u32 2147483647, %v1634_v26  ;;  %v1788_v2 = vor.u32 %v1787_v10, %v1786_v54  ;;  %v1789_v3 = vshll.u32 %v2752_v15, %v1777_v31  ;;  %v1790_v41 = vshrl.u32 %v2753_v43, %v1778_v9 }
 0x20a   :  { %v1519_v14 = vclz %v1911_v22  ;;  %v1782_v0 = vor.u32 %v1781_v25, %v1780_v6  ;;  %v1785_v17 = vor.u32 %v1784_v13, %v1783_v23  ;;  %vm1795_vm4 = vcmp.lt.s32.totalorder %v3682_v37, 1 }
 0x20b   :  { %v1638_v19 = vmul.f32 %v1637_v57, %v1635_v29  ;;  %v1791_v16 = vor.u32 %v1790_v41, %v1789_v3  ;;  %v1792_v4 = vshll.u32 %v2753_v43, %v1777_v31  ;;  %v1793_v52 = vshrl.u32 %v2754_v45, %v1778_v9 }
 0x20c   :  { %v1912_v32 = vadd.s32 4294967294, %v1519_v14  ;;  %v1779_v34 = vshrl.u32 %v2749_v44, %v1778_v9  ;;  %vm1796_vm5 = vcmp.lt.s32.totalorder %v3682_v37, 2  ;;  %vm1798_vm6 = vcmp.lt.s32.totalorder %v3682_v37, 4 }
 0x20d   :  { %v1639_v51 = vxor.u32 2147483648, %v1638_v19  ;;  %v1794_v8 = vor.u32 %v1793_v52, %v1792_v4  ;;  %vm1797_vm7 = vcmp.lt.s32.totalorder %v3682_v37, 3  ;;  %v1800_v38 = vsel %vm1798_vm6, %v1788_v2, 2102212464 }
 0x20e   :  { %vm1913_vm8 = vcmp.lt.s32.totalorder %v1912_v32, 0  ;;  %v1803_v21 = vsel %vm1795_vm4, %v1782_v0, %v1785_v17  ;;  %v1804_v49 = vsel %vm1798_vm6, %v1791_v16, 920167782  ;;  %v1799_v56 = vsel %vm1795_vm4, %v1779_v34, %v1782_v0 }
 0x20f   :  { %v1640_v36 = vsel %vm1557_vm9, %v1639_v51, %v1638_v19  ;;  %v1522_v40 = vsel %vm1913_vm8, 0, %v1912_v32  ;;  %v1805_v5 = vsel %vm1797_vm7, %v1788_v2, %v1804_v49  ;;  %v1801_v46 = vsel %vm1797_vm7, %v1785_v17, %v1800_v38 }
 0x210   :  { %v1643_v61 = vsel %vm3656_vm14, %v3415_v55, %v1640_v36  ;;  %v1523_v12 = vsub.s32 32, %v1522_v40  ;;  %v1527_v47 = vsub.s32 4294967266, %v1522_v40  ;;  %v1524_v60 = vshll.u32 %v3680_v63, %v1522_v40 }
 0x211   :  { %2634 = vcosq.f32 %v1643_v61  ;;  %v1806_v50 = vsel %vm1796_vm5, %v1803_v21, %v1805_v5  ;;  %v1807_v31 = vsel %vm1795_vm4, %v1785_v17, %v1788_v2  ;;  %v1808_v28 = vsel %vm1798_vm6, %v1794_v8, 1326507024 }
 0x212   :  { %2636 = vsinq.f32 %v1643_v61  ;;  %v1525_v7 = vshrl.u32 %v1507_v24, %v1523_v12  ;;  %v1528_v9 = vadd.s32 127, %v1527_v47  ;;  %v1809_v42 = vsel %vm1797_vm7, %v1791_v16, %v1808_v28 }
 0x213   :  { %vm1670_vm10 = vcmp.gt.s32.totalorder %v1669_v62, 0  ;;  %v1810_v26 = vsel %vm1796_vm5, %v1807_v31, %v1809_v42  ;;  %v3734_v63 = vmul.u32.u64.low %v3684_v48, %v1806_v50  ;;  %v3735_v57 = vmul.u32.u64.high %v3684_v48, %v1806_v50, %v3734_v63 }
 0x214   :  { %v1671_v20 = vsel %vm1670_vm10, %v1669_v62, 0  ;;  %v1526_v25 = vor.u32 %v1525_v7, %v1524_v60  ;;  %v1529_v29 = vshll.u32 %v1528_v9, 23  ;;  %vm1453_vm12 = vcmp.lt.s32.totalorder %v3495_v35, 0 }
 0x215   :  { %v3739_v13 = vmul.u32.u64.low %v3684_v48, %v1810_v26  ;;  %v3740_v54 = vmul.u32.u64.high %v3684_v48, %v1810_v26, %v3739_v13  ;;  %v1802_v24 = vsel %vm1796_vm5, %v1799_v56, %v1801_v46  ;;  %v1673_v10 = vand.u32 31, %v1671_v20 }
 0x216   :  { %vm1647_vm9 = vweird.f32 %v3415_v55  ;;  %vm1650_vm11 = vcmp.lt.s32.totalorder %v3676_v39, 2  ;;  %vm1651_vm13 = vcmp.eq.s32.totalorder %v3676_v39, 0  ;;  %vm1654_vm14 = vcmp.eq.s32.totalorder %v3676_v39, 2 }
 0x217   :  { %vm3751_vm15 = vcmp.le.f32.partialorder %v1451_v30, 0.7853982  ;;  %v1530_v6 = vor.u32 4788187, %v1529_v29  ;;  %v1538_v37 = vsel %vm1453_vm12, %v1537_v59, %v3671_v33  ;;  %v1821_v23 = vadd.s32 1, %v3735_v57 }
 0x218   :  { %v1666_v62 = vand.u32 8388607, %v1659_v58  ;;  %v1674_v19 = vsub.s32 32, %v1673_v10  ;;  %v1533_v3 = vcvt.s32.f32 %v1526_v25  ;;  %v1818_v30 = vmul.u32 %v3684_v48, %v1802_v24 }
 0x219   :  { %v1531_v2 = vand.u32 2147483647, %v1530_v6  ;;  %vm1820_vm0 = vc.u32 %v3740_v54, %v3734_v63  ;;  %v3767_v0 = vshrl.u32 %v1671_v20, 5  ;;  %v1676_v33 = vshll.u32 %v2749_v44, %v1673_v10 }
 0x21a   :  { %v1822_v14 = vsel %vm1820_vm0, %v1821_v23, %v3735_v57  ;;  %v1677_v59 = vshrl.u32 %v2750_v1, %v1674_v19  ;;  %v1680_v52 = vshrl.u32 %v2751_v11, %v1674_v19  ;;  %v1679_v48 = vshll.u32 %v2750_v1, %v1673_v10 }
 0x21b   :  { %v2635_v41 = vpop.eup %2634  ;;  %v1534_v16 = vmul.f32 %v1533_v3, %v1531_v2  ;;  %v1823_v4 = vadd.s32 %v1822_v14, %v1818_v30  ;;  %v1682_v34 = vshll.u32 %v2751_v11, %v1673_v10  ;;  %v1683_v36 = vshrl.u32 %v2752_v15, %v1674_v19 }
 0x21c   :  { %v2637_v17 = vpop.eup %2636  ;;  %v1655_v51 = vxor.u32 2147483648, %v2635_v41  ;;  %v1678_v21 = vor.u32 %v1677_v59, %v1676_v33  ;;  %v1685_v40 = vshll.u32 %v2752_v15, %v1673_v10  ;;  %v1686_v56 = vshrl.u32 %v2753_v43, %v1674_v19 }
 0x21d   :  { %v1652_v32 = vxor.u32 2147483648, %v2637_v17  ;;  %v1535_v38 = vxor.u32 2147483648, %v1534_v16  ;;  %v1824_v61 = vadd.s32 536870912, %v1823_v4  ;;  %v1689_v5 = vshrl.u32 %v2754_v45, %v1674_v19 }
 0x21e   :  { %v1656_v8 = vsel %vm1654_vm14, %v1655_v51, %v2637_v17  ;;  %v1681_v47 = vor.u32 %v1680_v52, %v1679_v48  ;;  %v1687_v60 = vor.u32 %v1686_v56, %v1685_v40  ;;  %v1688_v50 = vshll.u32 %v2753_v43, %v1673_v10 }
 0x21f   :  { %v1653_v49 = vsel %vm1651_vm13, %v2635_v41, %v1652_v32  ;;  %v1536_v11 = vsel %vm1453_vm12, %v1535_v38, %v1534_v16  ;;  %v3786_v12 = vshrl.u32 %v1824_v61, 30  ;;  %v1540_v45 = vsel %vm3751_vm15, 0, %v1538_v37 }
 0x220   :  { %v1657_v1 = vsel %vm1650_vm11, %v1653_v49, %v1656_v8  ;;  %v1539_v15 = vsel %vm3751_vm15, %v3495_v35, %v1536_v11  ;;  %v1684_v31 = vor.u32 %v1683_v36, %v1682_v34  ;;  %v1667_v28 = vor.u32 8388608, %v1666_v62 }
 0x221   :  { %v1658_v46 = vsel %vm1647_vm9, nan, %v1657_v1  ;;  %2638 = vcosq.f32 %v1539_v15  ;;  %v1826_v39 = vshll.u32 %v3786_v12, 30  ;;  %v1690_v7 = vor.u32 %v1689_v5, %v1688_v50 }
 0x222   :  { %1872 = vst [vmem:[#allocation8 + $0x28] sm:$0xff] %v1658_v46  ;;  %2640 = vsinq.f32 %v1539_v15  ;;  %vm1691_vm1 = vcmp.lt.s32.totalorder %v3767_v0, 1  ;;  %vm1694_vm2 = vcmp.lt.s32.totalorder %v3767_v0, 4  ;;  %v1544_v43 = vadd.s32 3, %v1540_v45 }
 0x223   :  { %v1827_v55 = vsub.s32 %v1823_v4, %v1826_v39  ;;  %v1699_v9 = vsel %vm1691_vm1, %v1678_v21, %v1681_v47  ;;  %vm1693_vm3 = vcmp.lt.s32.totalorder %v3767_v0, 3  ;;  %v1700_v42 = vsel %vm1694_vm2, %v1687_v60, 920167782 }
 0x224   :  { %vm1692_vm4 = vcmp.lt.s32.totalorder %v3767_v0, 2  ;;  %v1701_v57 = vsel %vm1693_vm3, %v1684_v31, %v1700_v42  ;;  %v1703_v20 = vsel %vm1691_vm1, %v1681_v47, %v1684_v31  ;;  %v1696_v25 = vsel %vm1694_vm2, %v1684_v31, 2102212464 }
 0x225   :  { %v1829_v26 = vsub.s32 0, %v1827_v55  ;;  %v1702_v29 = vsel %vm1692_vm4, %v1699_v9, %v1701_v57  ;;  %v1704_v13 = vsel %vm1694_vm2, %v1690_v7, 1326507024  ;;  %v1707_v24 = vshll.u32 %v1667_v28, 8 }
 0x226   :  { %v1675_v22 = vshrl.u32 %v2749_v44, %v1674_v19  ;;  %v1705_v6 = vsel %vm1693_vm3, %v1687_v60, %v1704_v13  ;;  %v1545_v37 = vand.u32 3, %v1544_v43  ;;  %v1697_v41 = vsel %vm1693_vm3, %v1681_v47, %v1696_v25 }
 0x227   :  { %v1923_v10 = vmin.u32 %v1829_v26, %v1827_v55  ;;  %v1706_v23 = vsel %vm1692_vm4, %v1703_v20, %v1705_v6  ;;  %v3814_v62 = vmul.u32.u64.low %v1707_v24, %v1702_v29  ;;  %v3815_v2 = vmul.u32.u64.high %v1707_v24, %v1702_v29, %v3814_v62 }
 0x228   :  { %v1695_v30 = vsel %vm1691_vm1, %v1675_v22, %v1678_v21  ;;  %v3821_v14 = vmul.u32.u64.low %v1707_v24, %v1706_v23  ;;  %v3822_v33 = vmul.u32.u64.high %v1707_v24, %v1706_v23, %v3821_v14  ;;  %vm1546_vm5 = vcmp.lt.s32.totalorder %v1545_v37, 2 }
 0x229   :  { %v1831_v3 = vclz %v1923_v10  ;;  %v1698_v51 = vsel %vm1692_vm4, %v1695_v30, %v1697_v41  ;;  %v1717_v16 = vadd.s32 1, %v3815_v2  ;;  %vm1547_vm6 = vcmp.eq.s32.totalorder %v1545_v37, 0 }
 0x22a   :  { %vm1550_vm7 = vcmp.eq.s32.totalorder %v1545_v37, 2  ;;  %v1819_v32 = vadd.s32 %v3734_v63, %v3740_v54  ;;  %vm1716_vm10 = vc.u32 %v3822_v33, %v3814_v62  ;;  %v1714_v38 = vmul.u32 %v1707_v24, %v1698_v51 }
 0x22b   :  { %v2639_v44 = vpop.eup %2638  ;;  %v1924_v19 = vadd.s32 4294967294, %v1831_v3  ;;  %vm1543_vm12 = vweird.f32 %v3495_v35  ;;  %v1718_v21 = vsel %vm1716_vm10, %v1717_v16, %v3815_v2  ;;  %v1849_v35 = vsub.s32 4, %v3786_v12 }
 0x22c   :  { %v2641_v59 = vpop.eup %2640  ;;  %v1551_v17 = vxor.u32 2147483648, %v2639_v44  ;;  %v1719_v5 = vadd.s32 %v1718_v21, %v1714_v38  ;;  %vm1765_vm9 = vcmp.lt.s32.totalorder %v3601_v18, 0  ;;  %vm1764_vm11 = vcmp.le.f32.partialorder %v1763_v27, 0.7853982 }
 0x22d   :  { %v1548_v4 = vxor.u32 2147483648, %v2641_v59  ;;  %vm1925_vm8 = vcmp.lt.s32.totalorder %v1924_v19, 0  ;;  %v1850_v7 = vsel %vm1765_vm9, %v1849_v35, %v3786_v12  ;;  %v1715_v25 = vadd.s32 %v3814_v62, %v3822_v33 }
 0x22e   :  { %v1552_v52 = vsel %vm1550_vm7, %v1551_v17, %v2641_v59  ;;  %v1834_v48 = vsel %vm1925_vm8, 0, %v1924_v19  ;;  %v1720_v1 = vadd.s32 536870912, %v1719_v5  ;;  %v1852_v42 = vsel %vm1764_vm11, 0, %v1850_v7 }
 0x22f   :  { %v1549_v34 = vsel %vm1547_vm6, %v2639_v44, %v1548_v4  ;;  %v1835_v36 = vsub.s32 32, %v1834_v48  ;;  %v1839_v8 = vsub.s32 4294967266, %v1834_v48  ;;  %v1836_v61 = vshll.u32 %v1827_v55, %v1834_v48 }
 0x230   :  { %v1553_v0 = vsel %vm1546_vm5, %v1549_v34, %v1552_v52  ;;  %v1721_v47 = vshrl.u32 %v1720_v1, 30  ;;  %v1856_v57 = vadd.s32 3, %v1852_v42  ;;  %vm1855_vm1 = vweird.f32 %v3601_v18 }
 0x231   :  { %v1554_v49 = vsel %vm1543_vm12, nan, %v1553_v0  ;;  %v1837_v40 = vshrl.u32 %v1819_v32, %v1835_v36  ;;  %v1840_v56 = vadd.s32 127, %v1839_v8  ;;  %vm1661_vm2 = vcmp.lt.s32.totalorder %v3651_v53, 0 }
 0x232   :  { %1871 = vst [vmem:[#allocation8 + $0x20] sm:$0xff] %v1554_v49  ;;  %v1722_v60 = vshll.u32 %v1721_v47, 30  ;;  %v1857_v24 = vand.u32 3, %v1856_v57  ;;  %v1745_v17 = vsub.s32 4, %v1721_v47  ;;  %vm1660_vm3 = vcmp.le.f32.partialorder %v1659_v58, 0.7853982 }
 0x233   :  { %v1838_v63 = vor.u32 %v1837_v40, %v1836_v61  ;;  %v1841_v54 = vshll.u32 %v1840_v56, 23  ;;  %vm1751_vm7 = vweird.f32 %v3651_v53 }
 0x234   :  { %v1723_v45 = vsub.s32 %v1719_v5, %v1722_v60  ;;  %vm1862_vm14 = vcmp.eq.s32.totalorder %v1857_v24, 2  ;;  %vm1859_vm15 = vcmp.eq.s32.totalorder %v1857_v24, 0  ;;  %vm1858_vm0 = vcmp.lt.s32.totalorder %v1857_v24, 2 }
 0x235   :  { %v1842_v11 = vor.u32 4788187, %v1841_v54  ;;  %v1845_v15 = vcvt.s32.f32 %v1838_v63  ;;  %v1746_v4 = vsel %vm1661_vm2, %v1745_v17, %v1721_v47 }
 0x236   :  { %v1725_v31 = vsub.s32 0, %v1723_v45  ;;  %v1748_v32 = vsel %vm1660_vm3, 0, %v1746_v4 }
 0x237   :  { %v1843_v46 = vand.u32 2147483647, %v1842_v11  ;;  %v1752_v48 = vadd.s32 3, %v1748_v32 }
 0x238   :  { %v1919_v55 = vmin.u32 %v1725_v31, %v1723_v45 }
 0x239   :  { %v1846_v50 = vmul.f32 %v1845_v15, %v1843_v46 }
 0x23a   :  { %v1727_v43 = vclz %v1919_v55 }
 0x23b   :  { %v1847_v39 = vxor.u32 2147483648, %v1846_v50 }
 0x23c   :  { %v1920_v26 = vadd.s32 4294967294, %v1727_v43 }
 0x23d   :  { %v1848_v28 = vsel %vm1765_vm9, %v1847_v39, %v1846_v50 }
 0x23e   :  { %v1851_v9 = vsel %vm1764_vm11, %v3601_v18, %v1848_v28  ;;  %vm1921_vm13 = vcmp.lt.s32.totalorder %v1920_v26, 0  ;;  %v1753_v18 = vand.u32 3, %v1752_v48 }
 0x23f   :  { %2642 = vcosq.f32 %v1851_v9  ;;  %v1730_v20 = vsel %vm1921_vm13, 0, %v1920_v26 }
 0x240   :  { %2644 = vsinq.f32 %v1851_v9  ;;  %v1731_v29 = vsub.s32 32, %v1730_v20  ;;  %v1735_v13 = vsub.s32 4294967266, %v1730_v20  ;;  %v1732_v27 = vshll.u32 %v1723_v45, %v1730_v20 }
 0x241   :  { %vm1758_vm4 = vcmp.eq.s32.totalorder %v1753_v18, 2  ;;  %vm1755_vm5 = vcmp.eq.s32.totalorder %v1753_v18, 0  ;;  %vm1754_vm6 = vcmp.lt.s32.totalorder %v1753_v18, 2 }
 0x242   :  { %v1733_v10 = vshrl.u32 %v1715_v25, %v1731_v29  ;;  %v1736_v22 = vadd.s32 127, %v1735_v13 }
 0x244   :  { %v1734_v6 = vor.u32 %v1733_v10, %v1732_v27  ;;  %v1737_v37 = vshll.u32 %v1736_v22, 23 }
 0x246   :  { %v1738_v30 = vor.u32 4788187, %v1737_v37  ;;  %v1741_v62 = vcvt.s32.f32 %v1734_v6 }
 0x248   :  { %v1739_v44 = vand.u32 2147483647, %v1738_v30 }
 0x249   :  { %v2643_v12 = vpop.eup %2642 }
 0x24a   :  { %v2645_v23 = vpop.eup %2644  ;;  %v1863_v2 = vxor.u32 2147483648, %v2643_v12  ;;  %v1742_v59 = vmul.f32 %v1741_v62, %v1739_v44 }
 0x24b   :  { %v1860_v3 = vxor.u32 2147483648, %v2645_v23 }
 0x24c   :  { %v1864_v41 = vsel %vm1862_vm14, %v1863_v2, %v2645_v23  ;;  %v1743_v51 = vxor.u32 2147483648, %v1742_v59 }
 0x24d   :  { %v1861_v14 = vsel %vm1859_vm15, %v2643_v12, %v1860_v3 }
 0x24e   :  { %v1865_v33 = vsel %vm1858_vm0, %v1861_v14, %v1864_v41  ;;  %v1744_v16 = vsel %vm1661_vm2, %v1743_v51, %v1742_v59 }
 0x24f   :  { %v1866_v19 = vsel %vm1855_vm1, nan, %v1865_v33  ;;  %v1747_v52 = vsel %vm1660_vm3, %v3651_v53, %v1744_v16 }
 0x250   :  { %1874 = vst [vmem:[#allocation8 + $0x38] sm:$0xff] %v1866_v19  ;;  %2646 = vcosq.f32 %v1747_v52 }
 0x251   :  { %2648 = vsinq.f32 %v1747_v52 }
 0x25a   :  { %v2647_v34 = vpop.eup %2646 }
 0x25b   :  { %v2649_v36 = vpop.eup %2648  ;;  %v1759_v8 = vxor.u32 2147483648, %v2647_v34 }
 0x25c   :  { %v1756_v38 = vxor.u32 2147483648, %v2649_v36 }
 0x25d   :  { %v1760_v0 = vsel %vm1758_vm4, %v1759_v8, %v2649_v36 }
 0x25e   :  { %v1757_v58 = vsel %vm1755_vm5, %v2647_v34, %v1756_v38 }
 0x25f   :  { %v1761_v61 = vsel %vm1754_vm6, %v1757_v58, %v1760_v0 }
 0x260   :  { %v1762_v21 = vsel %vm1751_vm7, nan, %v1761_v61 }
 0x261   :  { %1873 = vst [vmem:[#allocation8 + $0x30] sm:$0xff] %v1762_v21 }
 0x262   :  { %2727 = shalt.err (!%p2724_p0)
}
 0x263   :  { %s2728_s28 = scalar_lea.hbm %s3864_s3, 1024 }
 0x264   :  { %p2729_p1 = scmp.ne.s32.totalorder %s3864_s3, %s2728_s28  ;;  %p2732_p2 = scmp.lt.u32.totalorder %s2728_s28, %s3864_s3 }
 0x266   :  { %p2734_p3 = pnand %p2732_p2, %p2729_p1 }
 0x268   :  { %2737 = shalt.err (!%p2734_p3)
}
 0x269   :  { %1886 = dma.vmem_to_hbm [thread:$0]  %s1881_s22, 1024, %s3864_s3, [#allocation4], %s2746_s24, %s2746_s24, %s2747_s25  }
 0x26a   :  { %2742 = dma.done.wait [#allocation4], 1024  }
 0x26b   :  { %2743 = vsyncadd [#allocation4], 4294966272 }
 0x26c   :  { %1890 = vsyncpa [#allocation3], 1 }
 0x26d   :  { %1891 = vsyncpa [#allocation6], 1 }
 0x26e   :  { %1892 = vsyncpa [#allocation4], 1 }

</bundles_post_ra>
